<compile_context>
chip_gen: v7x
topology: tpu7x:2x2x1
jax: 0.10.0
libtpu: 0.0.40
codegen_flags: <defaults>
</compile_context>

<pallas_src>
import jax
import jax.numpy as jnp
from jax.experimental import pallas as pl
from jax.experimental.pallas import tpu as pltpu


def _round_up(x, m):
    return ((x + m - 1) // m) * m


def _cdiv(a, b):
    return -(-a // b)


def _leaky_relu(x, slope=0.2):
    return jnp.where(x >= 0, x, slope * x)


def _discriminator_kernel(ximg_ref, xemb_ref,
                          w1a_ref, w1b_ref, b1_ref,
                          w2_ref, b2_ref,
                          w3_ref, b3_ref,
                          w4_ref, b4_ref,
                          out_ref):
    """Fused MLP: split Linear1 -> LReLU -> Linear2 -> LReLU -> Linear3 ->
    LReLU -> Linear4 (VPU reduce) -> Sigmoid. bf16 MXU inputs, f32 accum."""
    # In-kernel bf16 cast: the activations arrive as f32 straight from HBM,
    # saving the wrapper-side pad+cast round trip.
    ximg = ximg_ref[...].astype(jnp.bfloat16)
    xemb = xemb_ref[...].astype(jnp.bfloat16)

    # First Linear, split across image / embedding inputs (no HBM concat).
    h = (jnp.dot(ximg, w1a_ref[...], preferred_element_type=jnp.float32)
         + jnp.dot(xemb, w1b_ref[...], preferred_element_type=jnp.float32)
         + b1_ref[...])
    h = _leaky_relu(h)

    # Dropout(0.4): identity in eval mode.
    h = jnp.dot(h.astype(jnp.bfloat16), w2_ref[...],
                preferred_element_type=jnp.float32) + b2_ref[...]
    h = _leaky_relu(h)

    # Dropout(0.4): identity in eval mode.
    h = jnp.dot(h.astype(jnp.bfloat16), w3_ref[...],
                preferred_element_type=jnp.float32) + b3_ref[...]
    h = _leaky_relu(h)

    # Final Linear(256, 1): N=1 MXU matmul is degenerate -> VPU mul + reduce.
    logits = jnp.sum(h * w4_ref[...], axis=-1, keepdims=True) + b4_ref[...]
    out_ref[...] = 1.0 / (1.0 + jnp.exp(-logits))   # Sigmoid (exp on EUP)


def discriminator_forward(img, label1, label2, params, tile_b=512):
    """img: (B, C, H, W) float32 (NCHW); label1/label2: (B,) int32."""
    emb = params["embedding"]                         # (n_classes, label_dim)
    B = img.shape[0]
    L = emb.shape[1]
    H = params["w1"].shape[1]

    # Flattened image stays f32 and un-padded in the feature dim; the kernel
    # block uses the full last dim so no lane padding is required.
    img_flat = img.reshape(B, -1).astype(jnp.float32)          # (B, P)
    P = img_flat.shape[1]
    # Tiny (B, 2L) concat of the two gathered embeddings (avoids the full
    # (B, P + 2L) concat HBM round-trip).
    e12 = jnp.concatenate(
        [jnp.take(emb, label1, axis=0), jnp.take(emb, label2, axis=0)],
        axis=-1).astype(jnp.float32)                            # (B, 2L)

    # Split first-layer weights to match the split inputs; weights go bf16.
    w1 = params["w1"]
    w1a = w1[:P].astype(jnp.bfloat16)                           # (P, H)
    w1b = w1[P:].astype(jnp.bfloat16)                           # (2L, H)
    w2_bf = params["w2"].astype(jnp.bfloat16)
    w3_bf = params["w3"].astype(jnp.bfloat16)
    w4_row = params["w4"].T.astype(jnp.float32)                 # (1, H)
    b1 = params["b1"].astype(jnp.float32)
    b2 = params["b2"].astype(jnp.float32)
    b3 = params["b3"].astype(jnp.float32)
    b4 = params["b4"].astype(jnp.float32)                       # (1, 1)

    # ---- batch tiling ------------------------------------------------------
    B8 = _round_up(B, 8)
    tile_b = max(8, _round_up(min(max(tile_b, 8), B8), 8))

    # VMEM budget: double-buffered f32 activation tiles + (worst case
    # double-buffered) resident weights must fit comfortably in v7x's 64 MiB.
    weight_bytes = (P * H + 2 * L * H + 2 * H * H) * 2 + (4 * H + 1) * 4
    per_row = 2 * ((P + 2 * L) * 4 + 4)          # 2 bufs of f32 in/out rows
    budget = (40 << 20) - 2 * weight_bytes
    max_tile = max(8, min(budget // per_row, 4096) // 8 * 8)
    tile_b = min(tile_b, max_tile)

    num_tiles = _cdiv(B8, tile_b)
    if B8 >= 16:
        num_tiles = max(num_tiles, 2)            # keep both v7x TCs busy
    TILE_B = _round_up(_cdiv(B8, num_tiles), 8)
    B_pad = TILE_B * num_tiles

    if B_pad != B:
        img_flat = jnp.pad(img_flat, ((0, B_pad - B), (0, 0)))
        e12 = jnp.pad(e12, ((0, B_pad - B), (0, 0)))

    footprint = TILE_B * per_row + 2 * weight_bytes
    vmem_limit = int(min(max(footprint + footprint // 4 + (4 << 20), 32 << 20),
                         64 << 20))

    grid = (num_tiles,)
    args = (img_flat, e12, w1a, w1b, b1, w2_bf, b2, w3_bf, b3, w4_row, b4)

    def _call(single_buffer_weights):
        if single_buffer_weights:
            def const(shape):
                return pl.BlockSpec(shape, lambda i: (0,) * len(shape),
                                    pipeline_mode=pl.Buffered(1))
        else:
            def const(shape):
                return pl.BlockSpec(shape, lambda i: (0,) * len(shape))

        def batch(shape):
            return pl.BlockSpec(shape, lambda i: (i, 0))

        return pl.pallas_call(
            _discriminator_kernel,
            out_shape=jax.ShapeDtypeStruct((B_pad, 1), jnp.float32),
            grid=grid,
            in_specs=[
                batch((TILE_B, P)),              # flattened image tile (f32)
                batch((TILE_B, 2 * L)),          # two label embeddings (f32)
                const((P, H)), const((2 * L, H)), const((1, H)),
                const((H, H)), const((1, H)),
                const((H, H)), const((1, H)),
                const((1, H)), const((1, 1)),
            ],
            out_specs=batch((TILE_B, 1)),
            compiler_params=pltpu.CompilerParams(
                dimension_semantics=("parallel",),
                vmem_limit_bytes=vmem_limit),
        )(*args)

    try:
        out = _call(True)        # single-buffered grid-invariant weights
    except Exception:
        out = _call(False)       # fallback if Buffered(1) is unsupported
    return out[:B]


def init_params(key, n_classes, label_dim, channels, img_size, hidden=256):
    """Deterministic synthetic parameters (shapes follow the module __init__,
    with the first Linear sized to what the forward actually feeds it)."""
    d_in = channels * img_size * img_size + 2 * label_dim
    ks = jax.random.split(key, 9)

    def lin(kw, fan_in, fan_out):
        bound = 1.0 / jnp.sqrt(fan_in)
        return jax.random.uniform(kw, (fan_in, fan_out), jnp.float32, -bound, bound)

    return {
        "embedding": jax.random.normal(ks[0], (n_classes, label_dim), jnp.float32),
        "w1": lin(ks[1], d_in, hidden),
        "b1": jax.random.uniform(ks[2], (1, hidden), jnp.float32, -0.05, 0.05),
        "w2": lin(ks[3], hidden, hidden),
        "b2": jax.random.uniform(ks[4], (1, hidden), jnp.float32, -0.05, 0.05),
        "w3": lin(ks[5], hidden, hidden),
        "b3": jax.random.uniform(ks[6], (1, hidden), jnp.float32, -0.05, 0.05),
        "w4": lin(ks[7], hidden, 1),
        "b4": jax.random.uniform(ks[8], (1, 1), jnp.float32, -0.05, 0.05),
    }


def reference_forward(img, label1, label2, params):
    """Pure-JAX reference with the same bf16-input / f32-accum precision policy."""
    B = img.shape[0]
    emb = params["embedding"]
    d_in = jnp.concatenate(
        [img.reshape(B, -1), emb[label1], emb[label2]], axis=-1)

    h = jnp.dot(d_in.astype(jnp.bfloat16), params["w1"].astype(jnp.bfloat16),
                preferred_element_type=jnp.float32) + params["b1"]
    h = jnp.where(h >= 0, h, 0.2 * h)
    h = jnp.dot(h.astype(jnp.bfloat16), params["w2"].astype(jnp.bfloat16),
                preferred_element_type=jnp.float32) + params["b2"]
    h = jnp.where(h >= 0, h, 0.2 * h)
    h = jnp.dot(h.astype(jnp.bfloat16), params["w3"].astype(jnp.bfloat16),
                preferred_element_type=jnp.float32) + params["b3"]
    h = jnp.where(h >= 0, h, 0.2 * h)
    logits = h @ params["w4"] + params["b4"]
    return 1.0 / (1.0 + jnp.exp(-logits))


if __name__ == "__main__":
    # Small, module-consistent shapes: B=2, channels=1, img_size=16,
    # n_classes=10, label_dim=32, hidden=256.
    B, C, IMG, N_CLASSES, LABEL_DIM = 2, 1, 16, 10, 32

    key = jax.random.PRNGKey(0)
    k_img, k_l1, k_l2, k_params = jax.random.split(key, 4)

    img = jax.random.normal(k_img, (B, C, IMG, IMG), jnp.float32)
    label1 = jax.random.randint(k_l1, (B,), 0, N_CLASSES, jnp.int32)
    label2 = jax.random.randint(k_l2, (B,), 0, N_CLASSES, jnp.int32)

    params = init_params(k_params, N_CLASSES, LABEL_DIM, C, IMG)

    validity = discriminator_forward(img, label1, label2, params)
    validity = jax.block_until_ready(validity)

    ref = jax.block_until_ready(reference_forward(img, label1, label2, params))
    assert validity.shape == (B, 1), validity.shape
    assert jnp.allclose(validity, ref, atol=1e-4, rtol=1e-4), (validity, ref)

    print("KERNEL_OK")
</pallas_src>

<mosaic_0001>
module attributes {stable_mosaic.version = 11 : i64} {
  func.func @_discriminator_kernel(%arg0: i32, %arg1: memref<8x256xf32, #tpu.memory_space<vmem>>, %arg2: memref<8x64xf32, #tpu.memory_space<vmem>>, %arg3: memref<256x256xbf16, #tpu.memory_space<vmem>>, %arg4: memref<64x256xbf16, #tpu.memory_space<vmem>>, %arg5: memref<1x256xf32, #tpu.memory_space<vmem>>, %arg6: memref<256x256xbf16, #tpu.memory_space<vmem>>, %arg7: memref<1x256xf32, #tpu.memory_space<vmem>>, %arg8: memref<256x256xbf16, #tpu.memory_space<vmem>>, %arg9: memref<1x256xf32, #tpu.memory_space<vmem>>, %arg10: memref<1x256xf32, #tpu.memory_space<vmem>>, %arg11: memref<1x1xf32, #tpu.memory_space<vmem>>, %arg12: memref<8x1xf32, #tpu.memory_space<vmem>>) attributes {dimension_semantics = [#tpu.dimension_semantics<parallel>], iteration_bounds = array<i64: 1>, scalar_prefetch = 0 : i64, scratch_operands = 0 : i64, tpu.core_type = #tpu.core_type<tc>, window_params = [{transform_indices = @transform_0, window_bounds = array<i64: 8, 256>}, {transform_indices = @transform_1, window_bounds = array<i64: 8, 64>}, {pipeline_mode = #tpu.pipeline_mode<synchronous>, transform_indices = @transform_2, window_bounds = array<i64: 256, 256>}, {pipeline_mode = #tpu.pipeline_mode<synchronous>, transform_indices = @transform_3, window_bounds = array<i64: 64, 256>}, {pipeline_mode = #tpu.pipeline_mode<synchronous>, transform_indices = @transform_4, window_bounds = array<i64: 1, 256>}, {pipeline_mode = #tpu.pipeline_mode<synchronous>, transform_indices = @transform_5, window_bounds = array<i64: 256, 256>}, {pipeline_mode = #tpu.pipeline_mode<synchronous>, transform_indices = @transform_6, window_bounds = array<i64: 1, 256>}, {pipeline_mode = #tpu.pipeline_mode<synchronous>, transform_indices = @transform_7, window_bounds = array<i64: 256, 256>}, {pipeline_mode = #tpu.pipeline_mode<synchronous>, transform_indices = @transform_8, window_bounds = array<i64: 1, 256>}, {pipeline_mode = #tpu.pipeline_mode<synchronous>, transform_indices = @transform_9, window_bounds = array<i64: 1, 256>}, {pipeline_mode = #tpu.pipeline_mode<synchronous>, transform_indices = @transform_10, window_bounds = array<i64: 1, 1>}, {transform_indices = @transform_11, window_bounds = array<i64: 8, 1>}]} {
    %c0 = arith.constant 0 : index
    %c0_0 = arith.constant 0 : index
    %0 = vector.load %arg1[%c0, %c0_0] : memref<8x256xf32, #tpu.memory_space<vmem>>, vector<8x256xf32>
    %1 = arith.truncf %0 : vector<8x256xf32> to vector<8x256xbf16>
    %c0_1 = arith.constant 0 : index
    %c0_2 = arith.constant 0 : index
    %2 = vector.load %arg2[%c0_1, %c0_2] : memref<8x64xf32, #tpu.memory_space<vmem>>, vector<8x64xf32>
    %3 = arith.truncf %2 : vector<8x64xf32> to vector<8x64xbf16>
    %c0_3 = arith.constant 0 : index
    %c0_4 = arith.constant 0 : index
    %4 = vector.load %arg3[%c0_3, %c0_4] : memref<256x256xbf16, #tpu.memory_space<vmem>>, vector<256x256xbf16>
    %cst = arith.constant dense<0.000000e+00> : vector<8x256xf32>
    %5 = tpu.matmul %1, %4, %cst {dimension_numbers = #tpu.dot_dimension_numbers<[1], [0], [0], [1], [0, 0, 1, 1], [], []>} : vector<8x256xbf16>, vector<256x256xbf16>, vector<8x256xf32> -> vector<8x256xf32>
    %c0_5 = arith.constant 0 : index
    %c0_6 = arith.constant 0 : index
    %6 = vector.load %arg4[%c0_5, %c0_6] : memref<64x256xbf16, #tpu.memory_space<vmem>>, vector<64x256xbf16>
    %cst_7 = arith.constant dense<0.000000e+00> : vector<8x256xf32>
    %7 = tpu.matmul %3, %6, %cst_7 {dimension_numbers = #tpu.dot_dimension_numbers<[1], [0], [0], [1], [0, 0, 1, 1], [], []>} : vector<8x64xbf16>, vector<64x256xbf16>, vector<8x256xf32> -> vector<8x256xf32>
    %8 = arith.addf %5, %7 : vector<8x256xf32>
    %c0_8 = arith.constant 0 : index
    %c0_9 = arith.constant 0 : index
    %9 = vector.load %arg5[%c0_8, %c0_9] : memref<1x256xf32, #tpu.memory_space<vmem>>, vector<1x256xf32>
    %10 = vector.broadcast %9 : vector<1x256xf32> to vector<8x256xf32>
    %11 = arith.addf %8, %10 : vector<8x256xf32>
    %cst_10 = arith.constant 0.000000e+00 : f32
    %12 = vector.broadcast %cst_10 : f32 to vector<8x256xf32>
    %13 = arith.cmpf oge, %11, %12 : vector<8x256xf32>
    %cst_11 = arith.constant 2.000000e-01 : f32
    %14 = vector.broadcast %cst_11 : f32 to vector<8x256xf32>
    %15 = arith.mulf %14, %11 : vector<8x256xf32>
    %16 = arith.select %13, %11, %15 : vector<8x256xi1>, vector<8x256xf32>
    %17 = arith.truncf %16 : vector<8x256xf32> to vector<8x256xbf16>
    %c0_12 = arith.constant 0 : index
    %c0_13 = arith.constant 0 : index
    %18 = vector.load %arg6[%c0_12, %c0_13] : memref<256x256xbf16, #tpu.memory_space<vmem>>, vector<256x256xbf16>
    %cst_14 = arith.constant dense<0.000000e+00> : vector<8x256xf32>
    %19 = tpu.matmul %17, %18, %cst_14 {dimension_numbers = #tpu.dot_dimension_numbers<[1], [0], [0], [1], [0, 0, 1, 1], [], []>} : vector<8x256xbf16>, vector<256x256xbf16>, vector<8x256xf32> -> vector<8x256xf32>
    %c0_15 = arith.constant 0 : index
    %c0_16 = arith.constant 0 : index
    %20 = vector.load %arg7[%c0_15, %c0_16] : memref<1x256xf32, #tpu.memory_space<vmem>>, vector<1x256xf32>
    %21 = vector.broadcast %20 : vector<1x256xf32> to vector<8x256xf32>
    %22 = arith.addf %19, %21 : vector<8x256xf32>
    %cst_17 = arith.constant 0.000000e+00 : f32
    %23 = vector.broadcast %cst_17 : f32 to vector<8x256xf32>
    %24 = arith.cmpf oge, %22, %23 : vector<8x256xf32>
    %cst_18 = arith.constant 2.000000e-01 : f32
    %25 = vector.broadcast %cst_18 : f32 to vector<8x256xf32>
    %26 = arith.mulf %25, %22 : vector<8x256xf32>
    %27 = arith.select %24, %22, %26 : vector<8x256xi1>, vector<8x256xf32>
    %28 = arith.truncf %27 : vector<8x256xf32> to vector<8x256xbf16>
    %c0_19 = arith.constant 0 : index
    %c0_20 = arith.constant 0 : index
    %29 = vector.load %arg8[%c0_19, %c0_20] : memref<256x256xbf16, #tpu.memory_space<vmem>>, vector<256x256xbf16>
    %cst_21 = arith.constant dense<0.000000e+00> : vector<8x256xf32>
    %30 = tpu.matmul %28, %29, %cst_21 {dimension_numbers = #tpu.dot_dimension_numbers<[1], [0], [0], [1], [0, 0, 1, 1], [], []>} : vector<8x256xbf16>, vector<256x256xbf16>, vector<8x256xf32> -> vector<8x256xf32>
    %c0_22 = arith.constant 0 : index
    %c0_23 = arith.constant 0 : index
    %31 = vector.load %arg9[%c0_22, %c0_23] : memref<1x256xf32, #tpu.memory_space<vmem>>, vector<1x256xf32>
    %32 = vector.broadcast %31 : vector<1x256xf32> to vector<8x256xf32>
    %33 = arith.addf %30, %32 : vector<8x256xf32>
    %cst_24 = arith.constant 0.000000e+00 : f32
    %34 = vector.broadcast %cst_24 : f32 to vector<8x256xf32>
    %35 = arith.cmpf oge, %33, %34 : vector<8x256xf32>
    %cst_25 = arith.constant 2.000000e-01 : f32
    %36 = vector.broadcast %cst_25 : f32 to vector<8x256xf32>
    %37 = arith.mulf %36, %33 : vector<8x256xf32>
    %38 = arith.select %35, %33, %37 : vector<8x256xi1>, vector<8x256xf32>
    %c0_26 = arith.constant 0 : index
    %c0_27 = arith.constant 0 : index
    %39 = vector.load %arg10[%c0_26, %c0_27] : memref<1x256xf32, #tpu.memory_space<vmem>>, vector<1x256xf32>
    %40 = vector.broadcast %39 : vector<1x256xf32> to vector<8x256xf32>
    %41 = arith.mulf %38, %40 : vector<8x256xf32>
    %cst_28 = arith.constant dense<0.000000e+00> : vector<8xf32>
    %42 = vector.multi_reduction <add>, %41, %cst_28 [1] : vector<8x256xf32> to vector<8xf32>
    %43 = vector.shape_cast %42 : vector<8xf32> to vector<8x1xf32>
    %c0_29 = arith.constant 0 : index
    %c0_30 = arith.constant 0 : index
    %44 = vector.load %arg11[%c0_29, %c0_30] : memref<1x1xf32, #tpu.memory_space<vmem>>, vector<1x1xf32>
    %45 = vector.broadcast %44 : vector<1x1xf32> to vector<8x1xf32>
    %46 = arith.addf %43, %45 : vector<8x1xf32>
    %cst_31 = arith.constant 0.000000e+00 : f32
    %47 = vector.broadcast %cst_31 : f32 to vector<8x1xf32>
    %48 = arith.subf %47, %46 : vector<8x1xf32>
    %49 = math.exp %48 : vector<8x1xf32>
    %cst_32 = arith.constant 1.000000e+00 : f32
    %50 = vector.broadcast %cst_32 : f32 to vector<8x1xf32>
    %51 = arith.addf %50, %49 : vector<8x1xf32>
    %cst_33 = arith.constant 1.000000e+00 : f32
    %52 = vector.broadcast %cst_33 : f32 to vector<8x1xf32>
    %53 = arith.divf %52, %51 : vector<8x1xf32>
    %c0_34 = arith.constant 0 : index
    %c0_35 = arith.constant 0 : index
    %54 = vector.load %arg12[%c0_34, %c0_35] : memref<8x1xf32, #tpu.memory_space<vmem>>, vector<8x1xf32>
    tpu.vector_store %arg12[%c0_34, %c0_35], %53 {strides = array<i32>} : memref<8x1xf32, #tpu.memory_space<vmem>>, vector<8x1xf32>,
    return
  }
  func.func @transform_0(%arg0: i32) -> (i32, i32) {
    %c0_i32 = arith.constant 0 : i32
    %c0_i32_0 = arith.constant 0 : i32
    return %arg0, %c0_i32 : i32, i32
  }
  func.func @transform_1(%arg0: i32) -> (i32, i32) {
    %c0_i32 = arith.constant 0 : i32
    %c0_i32_0 = arith.constant 0 : i32
    return %arg0, %c0_i32 : i32, i32
  }
  func.func @transform_2(%arg0: i32) -> (i32, i32) {
    %c0_i32 = arith.constant 0 : i32
    %c0_i32_0 = arith.constant 0 : i32
    %c0_i32_1 = arith.constant 0 : i32
    return %c0_i32, %c0_i32_0 : i32, i32
  }
  func.func @transform_3(%arg0: i32) -> (i32, i32) {
    %c0_i32 = arith.constant 0 : i32
    %c0_i32_0 = arith.constant 0 : i32
    %c0_i32_1 = arith.constant 0 : i32
    return %c0_i32, %c0_i32_0 : i32, i32
  }
  func.func @transform_4(%arg0: i32) -> (i32, i32) {
    %c0_i32 = arith.constant 0 : i32
    %c0_i32_0 = arith.constant 0 : i32
    %c0_i32_1 = arith.constant 0 : i32
    return %c0_i32, %c0_i32_0 : i32, i32
  }
  func.func @transform_5(%arg0: i32) -> (i32, i32) {
    %c0_i32 = arith.constant 0 : i32
    %c0_i32_0 = arith.constant 0 : i32
    %c0_i32_1 = arith.constant 0 : i32
    return %c0_i32, %c0_i32_0 : i32, i32
  }
  func.func @transform_6(%arg0: i32) -> (i32, i32) {
    %c0_i32 = arith.constant 0 : i32
    %c0_i32_0 = arith.constant 0 : i32
    %c0_i32_1 = arith.constant 0 : i32
    return %c0_i32, %c0_i32_0 : i32, i32
  }
  func.func @transform_7(%arg0: i32) -> (i32, i32) {
    %c0_i32 = arith.constant 0 : i32
    %c0_i32_0 = arith.constant 0 : i32
    %c0_i32_1 = arith.constant 0 : i32
    return %c0_i32, %c0_i32_0 : i32, i32
  }
  func.func @transform_8(%arg0: i32) -> (i32, i32) {
    %c0_i32 = arith.constant 0 : i32
    %c0_i32_0 = arith.constant 0 : i32
    %c0_i32_1 = arith.constant 0 : i32
    return %c0_i32, %c0_i32_0 : i32, i32
  }
  func.func @transform_9(%arg0: i32) -> (i32, i32) {
    %c0_i32 = arith.constant 0 : i32
    %c0_i32_0 = arith.constant 0 : i32
    %c0_i32_1 = arith.constant 0 : i32
    return %c0_i32, %c0_i32_0 : i32, i32
  }
  func.func @transform_10(%arg0: i32) -> (i32, i32) {
    %c0_i32 = arith.constant 0 : i32
    %c0_i32_0 = arith.constant 0 : i32
    %c0_i32_1 = arith.constant 0 : i32
    return %c0_i32, %c0_i32_0 : i32, i32
  }
  func.func @transform_11(%arg0: i32) -> (i32, i32) {
    %c0_i32 = arith.constant 0 : i32
    %c0_i32_0 = arith.constant 0 : i32
    return %arg0, %c0_i32 : i32, i32
  }
}

module attributes {stable_mosaic.version = 11 : i64} {
  func.func @_discriminator_kernel(%arg0: i32, %arg1: memref<8x256xf32, #tpu.memory_space<vmem>>, %arg2: memref<8x64xf32, #tpu.memory_space<vmem>>, %arg3: memref<256x256xbf16, #tpu.memory_space<vmem>>, %arg4: memref<64x256xbf16, #tpu.memory_space<vmem>>, %arg5: memref<1x256xf32, #tpu.memory_space<vmem>>, %arg6: memref<256x256xbf16, #tpu.memory_space<vmem>>, %arg7: memref<1x256xf32, #tpu.memory_space<vmem>>, %arg8: memref<256x256xbf16, #tpu.memory_space<vmem>>, %arg9: memref<1x256xf32, #tpu.memory_space<vmem>>, %arg10: memref<1x256xf32, #tpu.memory_space<vmem>>, %arg11: memref<1x1xf32, #tpu.memory_space<vmem>>, %arg12: memref<8x1xf32, #tpu.memory_space<vmem>>) attributes {dimension_semantics = [#tpu.dimension_semantics<parallel>], iteration_bounds = array<i64: 1>, scalar_prefetch = 0 : i64, scratch_operands = 0 : i64, tpu.core_type = #tpu.core_type<tc>, window_params = [{transform_indices = @transform_0, window_bounds = array<i64: 8, 256>}, {transform_indices = @transform_1, window_bounds = array<i64: 8, 64>}, {pipeline_mode = #tpu.pipeline_mode<synchronous>, transform_indices = @transform_2, window_bounds = array<i64: 256, 256>}, {pipeline_mode = #tpu.pipeline_mode<synchronous>, transform_indices = @transform_3, window_bounds = array<i64: 64, 256>}, {pipeline_mode = #tpu.pipeline_mode<synchronous>, transform_indices = @transform_4, window_bounds = array<i64: 1, 256>}, {pipeline_mode = #tpu.pipeline_mode<synchronous>, transform_indices = @transform_5, window_bounds = array<i64: 256, 256>}, {pipeline_mode = #tpu.pipeline_mode<synchronous>, transform_indices = @transform_6, window_bounds = array<i64: 1, 256>}, {pipeline_mode = #tpu.pipeline_mode<synchronous>, transform_indices = @transform_7, window_bounds = array<i64: 256, 256>}, {pipeline_mode = #tpu.pipeline_mode<synchronous>, transform_indices = @transform_8, window_bounds = array<i64: 1, 256>}, {pipeline_mode = #tpu.pipeline_mode<synchronous>, transform_indices = @transform_9, window_bounds = array<i64: 1, 256>}, {pipeline_mode = #tpu.pipeline_mode<synchronous>, transform_indices = @transform_10, window_bounds = array<i64: 1, 1>}, {transform_indices = @transform_11, window_bounds = array<i64: 8, 1>}]} {
    %c0 = arith.constant 0 : index
    %c0_0 = arith.constant 0 : index
    %0 = vector.load %arg1[%c0, %c0_0] : memref<8x256xf32, #tpu.memory_space<vmem>>, vector<8x256xf32>
    %1 = arith.truncf %0 : vector<8x256xf32> to vector<8x256xbf16>
    %c0_1 = arith.constant 0 : index
    %c0_2 = arith.constant 0 : index
    %2 = vector.load %arg2[%c0_1, %c0_2] : memref<8x64xf32, #tpu.memory_space<vmem>>, vector<8x64xf32>
    %3 = arith.truncf %2 : vector<8x64xf32> to vector<8x64xbf16>
    %c0_3 = arith.constant 0 : index
    %c0_4 = arith.constant 0 : index
    %4 = vector.load %arg3[%c0_3, %c0_4] : memref<256x256xbf16, #tpu.memory_space<vmem>>, vector<256x256xbf16>
    %cst = arith.constant dense<0.000000e+00> : vector<8x256xf32>
    %5 = tpu.matmul %1, %4, %cst {dimension_numbers = #tpu.dot_dimension_numbers<[1], [0], [0], [1], [0, 0, 1, 1], [], []>} : vector<8x256xbf16>, vector<256x256xbf16>, vector<8x256xf32> -> vector<8x256xf32>
    %c0_5 = arith.constant 0 : index
    %c0_6 = arith.constant 0 : index
    %6 = vector.load %arg4[%c0_5, %c0_6] : memref<64x256xbf16, #tpu.memory_space<vmem>>, vector<64x256xbf16>
    %cst_7 = arith.constant dense<0.000000e+00> : vector<8x256xf32>
    %7 = tpu.matmul %3, %6, %cst_7 {dimension_numbers = #tpu.dot_dimension_numbers<[1], [0], [0], [1], [0, 0, 1, 1], [], []>} : vector<8x64xbf16>, vector<64x256xbf16>, vector<8x256xf32> -> vector<8x256xf32>
    %8 = arith.addf %5, %7 : vector<8x256xf32>
    %c0_8 = arith.constant 0 : index
    %c0_9 = arith.constant 0 : index
    %9 = vector.load %arg5[%c0_8, %c0_9] : memref<1x256xf32, #tpu.memory_space<vmem>>, vector<1x256xf32>
    %10 = vector.broadcast %9 : vector<1x256xf32> to vector<8x256xf32>
    %11 = arith.addf %8, %10 : vector<8x256xf32>
    %cst_10 = arith.constant 0.000000e+00 : f32
    %12 = vector.broadcast %cst_10 : f32 to vector<8x256xf32>
    %13 = arith.cmpf oge, %11, %12 : vector<8x256xf32>
    %cst_11 = arith.constant 2.000000e-01 : f32
    %14 = vector.broadcast %cst_11 : f32 to vector<8x256xf32>
    %15 = arith.mulf %14, %11 : vector<8x256xf32>
    %16 = arith.select %13, %11, %15 : vector<8x256xi1>, vector<8x256xf32>
    %17 = arith.truncf %16 : vector<8x256xf32> to vector<8x256xbf16>
    %c0_12 = arith.constant 0 : index
    %c0_13 = arith.constant 0 : index
    %18 = vector.load %arg6[%c0_12, %c0_13] : memref<256x256xbf16, #tpu.memory_space<vmem>>, vector<256x256xbf16>
    %cst_14 = arith.constant dense<0.000000e+00> : vector<8x256xf32>
    %19 = tpu.matmul %17, %18, %cst_14 {dimension_numbers = #tpu.dot_dimension_numbers<[1], [0], [0], [1], [0, 0, 1, 1], [], []>} : vector<8x256xbf16>, vector<256x256xbf16>, vector<8x256xf32> -> vector<8x256xf32>
    %c0_15 = arith.constant 0 : index
    %c0_16 = arith.constant 0 : index
    %20 = vector.load %arg7[%c0_15, %c0_16] : memref<1x256xf32, #tpu.memory_space<vmem>>, vector<1x256xf32>
    %21 = vector.broadcast %20 : vector<1x256xf32> to vector<8x256xf32>
    %22 = arith.addf %19, %21 : vector<8x256xf32>
    %cst_17 = arith.constant 0.000000e+00 : f32
    %23 = vector.broadcast %cst_17 : f32 to vector<8x256xf32>
    %24 = arith.cmpf oge, %22, %23 : vector<8x256xf32>
    %cst_18 = arith.constant 2.000000e-01 : f32
    %25 = vector.broadcast %cst_18 : f32 to vector<8x256xf32>
    %26 = arith.mulf %25, %22 : vector<8x256xf32>
    %27 = arith.select %24, %22, %26 : vector<8x256xi1>, vector<8x256xf32>
    %28 = arith.truncf %27 : vector<8x256xf32> to vector<8x256xbf16>
    %c0_19 = arith.constant 0 : index
    %c0_20 = arith.constant 0 : index
    %29 = vector.load %arg8[%c0_19, %c0_20] : memref<256x256xbf16, #tpu.memory_space<vmem>>, vector<256x256xbf16>
    %cst_21 = arith.constant dense<0.000000e+00> : vector<8x256xf32>
    %30 = tpu.matmul %28, %29, %cst_21 {dimension_numbers = #tpu.dot_dimension_numbers<[1], [0], [0], [1], [0, 0, 1, 1], [], []>} : vector<8x256xbf16>, vector<256x256xbf16>, vector<8x256xf32> -> vector<8x256xf32>
    %c0_22 = arith.constant 0 : index
    %c0_23 = arith.constant 0 : index
    %31 = vector.load %arg9[%c0_22, %c0_23] : memref<1x256xf32, #tpu.memory_space<vmem>>, vector<1x256xf32>
    %32 = vector.broadcast %31 : vector<1x256xf32> to vector<8x256xf32>
    %33 = arith.addf %30, %32 : vector<8x256xf32>
    %cst_24 = arith.constant 0.000000e+00 : f32
    %34 = vector.broadcast %cst_24 : f32 to vector<8x256xf32>
    %35 = arith.cmpf oge, %33, %34 : vector<8x256xf32>
    %cst_25 = arith.constant 2.000000e-01 : f32
    %36 = vector.broadcast %cst_25 : f32 to vector<8x256xf32>
    %37 = arith.mulf %36, %33 : vector<8x256xf32>
    %38 = arith.select %35, %33, %37 : vector<8x256xi1>, vector<8x256xf32>
    %c0_26 = arith.constant 0 : index
    %c0_27 = arith.constant 0 : index
    %39 = vector.load %arg10[%c0_26, %c0_27] : memref<1x256xf32, #tpu.memory_space<vmem>>, vector<1x256xf32>
    %40 = vector.broadcast %39 : vector<1x256xf32> to vector<8x256xf32>
    %41 = arith.mulf %38, %40 : vector<8x256xf32>
    %cst_28 = arith.constant dense<0.000000e+00> : vector<8xf32>
    %42 = vector.multi_reduction <add>, %41, %cst_28 [1] : vector<8x256xf32> to vector<8xf32>
    %43 = vector.shape_cast %42 : vector<8xf32> to vector<8x1xf32>
    %c0_29 = arith.constant 0 : index
    %c0_30 = arith.constant 0 : index
    %44 = vector.load %arg11[%c0_29, %c0_30] : memref<1x1xf32, #tpu.memory_space<vmem>>, vector<1x1xf32>
    %45 = vector.broadcast %44 : vector<1x1xf32> to vector<8x1xf32>
    %46 = arith.addf %43, %45 : vector<8x1xf32>
    %cst_31 = arith.constant 0.000000e+00 : f32
    %47 = vector.broadcast %cst_31 : f32 to vector<8x1xf32>
    %48 = arith.subf %47, %46 : vector<8x1xf32>
    %49 = math.exp %48 : vector<8x1xf32>
    %cst_32 = arith.constant 1.000000e+00 : f32
    %50 = vector.broadcast %cst_32 : f32 to vector<8x1xf32>
    %51 = arith.addf %50, %49 : vector<8x1xf32>
    %cst_33 = arith.constant 1.000000e+00 : f32
    %52 = vector.broadcast %cst_33 : f32 to vector<8x1xf32>
    %53 = arith.divf %52, %51 : vector<8x1xf32>
    %c0_34 = arith.constant 0 : index
    %c0_35 = arith.constant 0 : index
    %54 = vector.load %arg12[%c0_34, %c0_35] : memref<8x1xf32, #tpu.memory_space<vmem>>, vector<8x1xf32>
    tpu.vector_store %arg12[%c0_34, %c0_35], %53 {strides = array<i32>} : memref<8x1xf32, #tpu.memory_space<vmem>>, vector<8x1xf32>,
    return
  }
  func.func @transform_0(%arg0: i32) -> (i32, i32) {
    %c0_i32 = arith.constant 0 : i32
    %c0_i32_0 = arith.constant 0 : i32
    return %arg0, %c0_i32 : i32, i32
  }
  func.func @transform_1(%arg0: i32) -> (i32, i32) {
    %c0_i32 = arith.constant 0 : i32
    %c0_i32_0 = arith.constant 0 : i32
    return %arg0, %c0_i32 : i32, i32
  }
  func.func @transform_2(%arg0: i32) -> (i32, i32) {
    %c0_i32 = arith.constant 0 : i32
    %c0_i32_0 = arith.constant 0 : i32
    %c0_i32_1 = arith.constant 0 : i32
    return %c0_i32, %c0_i32_0 : i32, i32
  }
  func.func @transform_3(%arg0: i32) -> (i32, i32) {
    %c0_i32 = arith.constant 0 : i32
    %c0_i32_0 = arith.constant 0 : i32
    %c0_i32_1 = arith.constant 0 : i32
    return %c0_i32, %c0_i32_0 : i32, i32
  }
  func.func @transform_4(%arg0: i32) -> (i32, i32) {
    %c0_i32 = arith.constant 0 : i32
    %c0_i32_0 = arith.constant 0 : i32
    %c0_i32_1 = arith.constant 0 : i32
    return %c0_i32, %c0_i32_0 : i32, i32
  }
  func.func @transform_5(%arg0: i32) -> (i32, i32) {
    %c0_i32 = arith.constant 0 : i32
    %c0_i32_0 = arith.constant 0 : i32
    %c0_i32_1 = arith.constant 0 : i32
    return %c0_i32, %c0_i32_0 : i32, i32
  }
  func.func @transform_6(%arg0: i32) -> (i32, i32) {
    %c0_i32 = arith.constant 0 : i32
    %c0_i32_0 = arith.constant 0 : i32
    %c0_i32_1 = arith.constant 0 : i32
    return %c0_i32, %c0_i32_0 : i32, i32
  }
  func.func @transform_7(%arg0: i32) -> (i32, i32) {
    %c0_i32 = arith.constant 0 : i32
    %c0_i32_0 = arith.constant 0 : i32
    %c0_i32_1 = arith.constant 0 : i32
    return %c0_i32, %c0_i32_0 : i32, i32
  }
  func.func @transform_8(%arg0: i32) -> (i32, i32) {
    %c0_i32 = arith.constant 0 : i32
    %c0_i32_0 = arith.constant 0 : i32
    %c0_i32_1 = arith.constant 0 : i32
    return %c0_i32, %c0_i32_0 : i32, i32
  }
  func.func @transform_9(%arg0: i32) -> (i32, i32) {
    %c0_i32 = arith.constant 0 : i32
    %c0_i32_0 = arith.constant 0 : i32
    %c0_i32_1 = arith.constant 0 : i32
    return %c0_i32, %c0_i32_0 : i32, i32
  }
  func.func @transform_10(%arg0: i32) -> (i32, i32) {
    %c0_i32 = arith.constant 0 : i32
    %c0_i32_0 = arith.constant 0 : i32
    %c0_i32_1 = arith.constant 0 : i32
    return %c0_i32, %c0_i32_0 : i32, i32
  }
  func.func @transform_11(%arg0: i32) -> (i32, i32) {
    %c0_i32 = arith.constant 0 : i32
    %c0_i32_0 = arith.constant 0 : i32
    return %arg0, %c0_i32 : i32, i32
  }
}

</mosaic_0001>

<bundles_post_ra>
// kernel: tpu_custom_call.1
= control target key start
LH: loop header
LB: loop body
LE: loop exit
PB: predicated region body
PF: predicated region fallthrough
CT: control target
= control target key end

     0   :  { %s1616_s0 = inlined_call_operand.hbm [shape: f32[8,256], index: 0, kind: input, shape index: {}]   ;;  %s1617_s1 = inlined_call_operand.hbm [shape: f32[8,64], index: 1, kind: input, shape index: {}]   ;;  %s1618_s2 = inlined_call_operand.hbm [shape: bf16[256,256], index: 2, kind: input, shape index: {}]   ;;  %s1619_s3 = inlined_call_operand.hbm [shape: bf16[64,256], index: 3, kind: input, shape index: {}]   ;;  %s1620_s4 = inlined_call_operand.vmem [shape: f32[1,256], index: 4, kind: input, shape index: {}]   ;;  %s1621_s5 = inlined_call_operand.hbm [shape: bf16[256,256], index: 5, kind: input, shape index: {}]   ;;  %s1622_s6 = inlined_call_operand.vmem [shape: f32[1,256], index: 6, kind: input, shape index: {}]   ;;  %s1623_s7 = inlined_call_operand.hbm [shape: bf16[256,256], index: 7, kind: input, shape index: {}]   ;;  %s1624_s8 = inlined_call_operand.vmem [shape: f32[1,256], index: 8, kind: input, shape index: {}]   ;;  %s1625_s9 = inlined_call_operand.vmem [shape: f32[1,256], index: 9, kind: input, shape index: {}]   ;;  %s1626_s10 = inlined_call_operand.<no memory space> [shape: f32[1,1], index: 10, kind: input, shape index: {}]   ;;  %s1627_s11 = inlined_call_operand.vmem [shape: f32[8,1], index: 11, kind: output, shape index: {}]  }
   0x1   :  { %v16_v0 = vstv %s1626_s10 }
   0x2   :  { %17 = vst [vmem:[#allocation2] sm:$0x1] %v16_v0 }
   0x3   :  { %18 = vsyncpa [#allocation4], 0 }
   0x4   :  { %19 = vsyncpa [#allocation6], 0 }
   0x5   :  { %20 = vsyncpa [#allocation9], 0 }
   0x6   :  { %21 = vsyncpa [#allocation12], 0  ;;  %s1433_s19 = smov [#allocation5]   ;;  %s1293_s23 = scalar_lea.hbm %s1617_s1, 128 }
   0x7   :  { %s38_s20 = sshll.u32 %s1433_s19, 4  ;;  %p1294_p0 = scmp.ne.s32.totalorder %s1617_s1, %s1293_s23  ;;  %s39_s20 = int_to_ptr.vmem [resolvable:$true] %s38_s20 }
   0x8   :  { %p1297_p1 = scmp.lt.u32.totalorder %s1293_s23, %s1617_s1 }
   0xa   :  { %p1299_p2 = pnand %p1297_p1, %p1294_p0 }
   0xc   :  { %1302 = shalt.err (!%p1299_p2)
}
   0xd   :  { %s1303_s10 = scalar_lea.vmem %s39_s20, 128  ;;  %p1308_p4 = scmp.lt.s32.totalorder %s39_s20, %s39_s20 }
   0xe   :  { %p1304_p3 = scmp.ne.s32.totalorder %s39_s20, %s1303_s10  ;;  %p1309_p5 = scmp.lt.s32.totalorder %s1303_s10, %s1303_s10 }
  0x10   :  { %p1310_p6 = por %p1309_p5, %p1308_p4 }
  0x12   :  { %p1311_p7 = pnand %p1310_p6, %p1304_p3 }
  0x14   :  { %1314 = shalt.err (!%p1311_p7)
}
  0x15   :  { %41 = dma.hbm_to_vmem [thread:$0]  %s1617_s1, 128, %s39_s20, [#allocation6]  }
  0x16   :  { %s1434_s30 = smov [#allocation8]   ;;  %s1435_s13 = smov [#allocation3]  }
  0x17   :  { %s59_s12 = sshll.u32 %s1434_s30, 4  ;;  %s28_s14 = sshll.u32 %s1435_s13, 4  ;;  %s60_s12 = int_to_ptr.vmem [resolvable:$true] %s59_s12  ;;  %s29_s14 = int_to_ptr.vmem [resolvable:$true] %s28_s14 }
  0x18   :  { %s1315_s17 = scalar_lea.hbm %s1619_s3, 1024 }
  0x19   :  { %p1316_p8 = scmp.ne.s32.totalorder %s1619_s3, %s1315_s17  ;;  %p1319_p9 = scmp.lt.u32.totalorder %s1315_s17, %s1619_s3 }
  0x1b   :  { %p1321_p10 = pnand %p1319_p9, %p1316_p8 }
  0x1d   :  { %1324 = shalt.err (!%p1321_p10)
}
  0x1e   :  { %s1325_s1 = scalar_lea.vmem %s60_s12, 1024  ;;  %p1330_p12 = scmp.lt.s32.totalorder %s60_s12, %s60_s12 }
  0x1f   :  { %p1326_p11 = scmp.ne.s32.totalorder %s60_s12, %s1325_s1  ;;  %p1331_p13 = scmp.lt.s32.totalorder %s1325_s1, %s1325_s1 }
  0x21   :  { %p1332_p0 = por %p1331_p13, %p1330_p12 }
  0x23   :  { %p1333_p1 = pnand %p1332_p0, %p1326_p11 }
  0x25   :  { %1336 = shalt.err (!%p1333_p1)
}
  0x26   :  { %s1436_s20 = smov 128   ;;  %s1437_s23 = smov 8  }
  0x27   :  { %65 = dma.hbm_to_vmem [thread:$0]  %s1619_s3, 1024, %s60_s12, [#allocation9], %s1436_s20, %s1436_s20, %s1437_s23  }
  0x28   :  { %s1337_s10 = scalar_lea.hbm %s1616_s0, 256 }
  0x29   :  { %p1338_p2 = scmp.ne.s32.totalorder %s1616_s0, %s1337_s10  ;;  %p1341_p3 = scmp.lt.u32.totalorder %s1337_s10, %s1616_s0 }
  0x2b   :  { %p1343_p4 = pnand %p1341_p3, %p1338_p2 }
  0x2d   :  { %1346 = shalt.err (!%p1343_p4)
}
  0x2e   :  { %s1347_s15 = scalar_lea.vmem %s29_s14, 256  ;;  %p1352_p6 = scmp.lt.s32.totalorder %s29_s14, %s29_s14 }
  0x2f   :  { %p1348_p5 = scmp.ne.s32.totalorder %s29_s14, %s1347_s15  ;;  %p1353_p7 = scmp.lt.s32.totalorder %s1347_s15, %s1347_s15 }
  0x31   :  { %p1354_p8 = por %p1353_p7, %p1352_p6 }
  0x33   :  { %p1355_p9 = pnand %p1354_p8, %p1348_p5 }
  0x35   :  { %1358 = shalt.err (!%p1355_p9)
}
  0x36   :  { %31 = dma.hbm_to_vmem [thread:$0]  %s1616_s0, 256, %s29_s14, [#allocation4]  }
  0x37   :  { %s1438_s16 = smov [#allocation7]   ;;  %s1439_s18 = smov [#allocation10]  }
  0x38   :  { %s47_s17 = sshll.u32 %s1438_s16, 4  ;;  %s73_s19 = sshll.u32 %s1439_s18, 4  ;;  %s48_s17 = int_to_ptr.vmem [resolvable:$true] %s47_s17  ;;  %s74_s19 = int_to_ptr.vmem [resolvable:$true] %s73_s19 }
  0x39   :  { %s1359_s1 = scalar_lea.hbm %s1618_s2, 4096 }
  0x3a   :  { %p1360_p10 = scmp.ne.s32.totalorder %s1618_s2, %s1359_s1  ;;  %p1363_p11 = scmp.lt.u32.totalorder %s1359_s1, %s1618_s2 }
  0x3c   :  { %p1365_p12 = pnand %p1363_p11, %p1360_p10 }
  0x3e   :  { %1368 = shalt.err (!%p1365_p12)
}
  0x3f   :  { %s1369_s0 = scalar_lea.vmem %s48_s17, 4096  ;;  %p1374_p0 = scmp.lt.s32.totalorder %s48_s17, %s48_s17 }
  0x40   :  { %p1370_p13 = scmp.ne.s32.totalorder %s48_s17, %s1369_s0  ;;  %p1375_p1 = scmp.lt.s32.totalorder %s1369_s0, %s1369_s0 }
  0x42   :  { %p1376_p2 = por %p1375_p1, %p1374_p0 }
  0x44   :  { %p1377_p3 = pnand %p1376_p2, %p1370_p13 }
  0x46   :  { %1380 = shalt.err (!%p1377_p3)
}
  0x47   :  { %53 = dma.hbm_to_vmem [thread:$0]  %s1618_s2, 4096, %s48_s17, [#allocation6], %s1436_s20, %s1436_s20, %s1437_s23  }
  0x48   :  { %s1381_s30 = scalar_lea.hbm %s1621_s5, 4096 }
  0x49   :  { %p1382_p4 = scmp.ne.s32.totalorder %s1621_s5, %s1381_s30  ;;  %p1385_p5 = scmp.lt.u32.totalorder %s1381_s30, %s1621_s5 }
  0x4b   :  { %p1387_p6 = pnand %p1385_p5, %p1382_p4 }
  0x4d   :  { %1390 = shalt.err (!%p1387_p6)
}
  0x4e   :  { %s1391_s16 = scalar_lea.vmem %s74_s19, 4096  ;;  %p1396_p8 = scmp.lt.s32.totalorder %s74_s19, %s74_s19 }
  0x4f   :  { %p1392_p7 = scmp.ne.s32.totalorder %s74_s19, %s1391_s16  ;;  %p1397_p9 = scmp.lt.s32.totalorder %s1391_s16, %s1391_s16 }
  0x51   :  { %p1398_p10 = por %p1397_p9, %p1396_p8 }
  0x53   :  { %p1399_p11 = pnand %p1398_p10, %p1392_p7 }
  0x55   :  { %1402 = shalt.err (!%p1399_p11)
}
  0x56   :  { %79 = dma.hbm_to_vmem [thread:$0]  %s1621_s5, 4096, %s74_s19, [#allocation9], %s1436_s20, %s1436_s20, %s1437_s23  }
  0x57   :  { %s1440_s18 = smov [#allocation11]   ;;  %s1403_s24 = scalar_lea.hbm %s1623_s7, 4096 }
  0x58   :  { %s87_s21 = sshll.u32 %s1440_s18, 4  ;;  %p1404_p12 = scmp.ne.s32.totalorder %s1623_s7, %s1403_s24  ;;  %s88_s21 = int_to_ptr.vmem [resolvable:$true] %s87_s21 }
  0x59   :  { %p1407_p13 = scmp.lt.u32.totalorder %s1403_s24, %s1623_s7 }
  0x5b   :  { %p1409_p0 = pnand %p1407_p13, %p1404_p12 }
  0x5d   :  { %1412 = shalt.err (!%p1409_p0)
}
  0x5e   :  { %s1413_s14 = scalar_lea.vmem %s88_s21, 4096  ;;  %p1418_p2 = scmp.lt.s32.totalorder %s88_s21, %s88_s21 }
  0x5f   :  { %p1414_p1 = scmp.ne.s32.totalorder %s88_s21, %s1413_s14  ;;  %p1419_p3 = scmp.lt.s32.totalorder %s1413_s14, %s1413_s14 }
  0x61   :  { %p1420_p4 = por %p1419_p3, %p1418_p2 }
  0x63   :  { %p1421_p5 = pnand %p1420_p4, %p1414_p1 }
  0x65   :  { %1424 = shalt.err (!%p1421_p5)
}
  0x66   :  { %93 = dma.hbm_to_vmem [thread:$0]  %s1623_s7, 4096, %s88_s21, [#allocation12], %s1436_s20, %s1436_s20, %s1437_s23  }
  0x67   :  { %1425 = dma.done.wait [#allocation4], 256  }
  0x68   :  { %1426 = vsyncadd [#allocation4], 4294967040 }
  0x69   :  { %1427 = dma.done.wait [#allocation6], 4224  }
  0x6a   :  { %1428 = vsyncadd [#allocation6], 4294963072 }
  0x6b   :  { %1429 = dma.done.wait [#allocation9], 5120  }
  0x6c   :  { %1430 = vsyncadd [#allocation9], 4294962176 }
  0x6d   :  { %1431 = dma.done.wait [#allocation12], 4096  }
  0x6e   :  { %1432 = vsyncadd [#allocation12], 4294963200  ;;  %v1441_v1 = vmov 0   ;;  %v1133_v2 = vld [vmem:[#allocation7 + $0x4] ss:$8 sps:$4 sm:$0xff]   ;;  %v123_v26 = vld [vmem:[#allocation5] sm:$0xff] }
  0x6f   :  { %241 = vmatprep.mubr.bf16.mxu0 %v1441_v1  ;;  %v1135_v3 = vld [vmem:[#allocation7] ss:$8 sps:$4 sm:$0xff]   ;;  %410 = vmatprep.subr.bf16.mxu1 %v1133_v2  ;;  %v1136_v4 = vld [vmem:[#allocation7 + $0x14] ss:$8 sps:$4 sm:$0xff]   ;;  %v1138_v5 = vld [vmem:[#allocation7 + $0x10] ss:$8 sps:$4 sm:$0xff]   ;;  %v124_v31 = vpack.c.bf16 %v123_v26, %v123_v26 }
  0x70   :  { %411 = vmatpush1.bf16.msra.mxu1 %v1135_v3  ;;  %v1139_v6 = vld [vmem:[#allocation7 + $0x24] ss:$8 sps:$4 sm:$0xff]   ;;  %v1141_v7 = vld [vmem:[#allocation7 + $0x20] ss:$8 sps:$4 sm:$0xff]   ;;  %v1142_v8 = vld [vmem:[#allocation7 + $0x34] ss:$8 sps:$4 sm:$0xff]  }
  0x71   :  { %412 = vmatprep.subr.bf16.mxu1 %v1136_v4  ;;  %v1144_v9 = vld [vmem:[#allocation7 + $0x30] ss:$8 sps:$4 sm:$0xff]   ;;  %v1145_v10 = vld [vmem:[#allocation7 + $0x44] ss:$8 sps:$4 sm:$0xff]   ;;  %v1147_v11 = vld [vmem:[#allocation7 + $0x40] ss:$8 sps:$4 sm:$0xff]  }
  0x72   :  { %v1148_v12 = vld [vmem:[#allocation7 + $0x54] ss:$8 sps:$4 sm:$0xff]   ;;  %v1168_v13 = vld [vmem:[#allocation8 + $0x4] ss:$8 sps:$4 sm:$0xff]   ;;  %v1171_v14 = vld [vmem:[#allocation8] ss:$8 sps:$4 sm:$0xff]  }
  0x73   :  { %209 = vmatprep.subr.bf16.mxu0 %v1168_v13  ;;  %v1150_v15 = vld [vmem:[#allocation7 + $0x50] ss:$8 sps:$4 sm:$0xff]   ;;  %v1174_v16 = vld [vmem:[#allocation8 + $0x14] ss:$8 sps:$4 sm:$0xff]   ;;  %v1151_v18 = vld [vmem:[#allocation7 + $0x64] ss:$8 sps:$4 sm:$0xff]  }
  0x74   :  { %413 = vmatpush1.bf16.msra.mxu1 %v1138_v5  ;;  %210 = vmatpush1.bf16.msra.mxu0 %v1171_v14  ;;  %v1177_v17 = vld [vmem:[#allocation8 + $0x10] ss:$8 sps:$4 sm:$0xff]   ;;  %v1180_v19 = vld [vmem:[#allocation8 + $0x24] ss:$8 sps:$4 sm:$0xff]   ;;  %v1153_v20 = vld [vmem:[#allocation7 + $0x60] ss:$8 sps:$4 sm:$0xff]  }
  0x75   :  { %414 = vmatprep.subr.bf16.mxu1 %v1139_v6  ;;  %211 = vmatprep.subr.bf16.mxu0 %v1174_v16  ;;  %v1183_v21 = vld [vmem:[#allocation8 + $0x20] ss:$8 sps:$4 sm:$0xff]   ;;  %v1154_v22 = vld [vmem:[#allocation7 + $0x74] ss:$8 sps:$4 sm:$0xff]   ;;  %v1156_v24 = vld [vmem:[#allocation7 + $0x70] ss:$8 sps:$4 sm:$0xff]  }
  0x76   :  { %v1186_v23 = vld [vmem:[#allocation8 + $0x34] ss:$8 sps:$4 sm:$0xff]   ;;  %v1189_v25 = vld [vmem:[#allocation8 + $0x30] ss:$8 sps:$4 sm:$0xff]   ;;  %v1157_v28 = vld [vmem:[#allocation7 + $0x84] ss:$8 sps:$4 sm:$0xff]  }
  0x77   :  { %v120_v27 = vld [vmem:[#allocation3 + $0x8] sm:$0xff]  ;;  %v1195_v30 = vld [vmem:[#allocation10 + $0x4] ss:$8 sps:$4 sm:$0xff]   ;;  %v1159_v32 = vld [vmem:[#allocation7 + $0x80] ss:$8 sps:$4 sm:$0xff]   ;;  %vm205_vm0 = vcmask 523264  }
  0x78   :  { %415 = vmatpush1.bf16.msra.mxu1 %v1141_v7  ;;  %212 = vmatpush1.bf16.msra.mxu0 %v1177_v17  ;;  %v122_v29 = vpack.c.bf16 %v120_v27, %v120_v27  ;;  %v1193_v33 = vld [vmem:[#allocation10] ss:$8 sps:$4 sm:$0xff]   ;;  %v1160_v34 = vld [vmem:[#allocation7 + $0x94] ss:$8 sps:$4 sm:$0xff]   ;;  %v1162_v36 = vld [vmem:[#allocation7 + $0x90] ss:$8 sps:$4 sm:$0xff]  }
  0x79   :  { %416 = vmatprep.subr.bf16.mxu1 %v1142_v8  ;;  %213 = vmatprep.subr.bf16.mxu0 %v1180_v19  ;;  %v1198_v35 = vld [vmem:[#allocation10 + $0x14] ss:$8 sps:$4 sm:$0xff]   ;;  %v1196_v37 = vld [vmem:[#allocation10 + $0x10] ss:$8 sps:$4 sm:$0xff]   ;;  %v1163_v38 = vld [vmem:[#allocation7 + $0xa4] ss:$8 sps:$4 sm:$0xff]  }
  0x7a   :  { %442 = vmatprep.mubr.bf16.mxu1 %v122_v29  ;;  %v1201_v39 = vld [vmem:[#allocation10 + $0x24] ss:$8 sps:$4 sm:$0xff]   ;;  %v1165_v40 = vld [vmem:[#allocation7 + $0xa0] ss:$8 sps:$4 sm:$0xff]   ;;  %v1166_v42 = vld [vmem:[#allocation7 + $0xb4] ss:$8 sps:$4 sm:$0xff]  }
  0x7b   :  { %v1199_v41 = vld [vmem:[#allocation10 + $0x20] ss:$8 sps:$4 sm:$0xff]   ;;  %v1204_v43 = vld [vmem:[#allocation10 + $0x34] ss:$8 sps:$4 sm:$0xff]   ;;  %v1170_v44 = vld [vmem:[#allocation7 + $0xb0] ss:$8 sps:$4 sm:$0xff]  }
  0x7c   :  { %417 = vmatpush1.bf16.msra.mxu1 %v1144_v9  ;;  %214 = vmatpush1.bf16.msra.mxu0 %v1183_v21  ;;  %v1202_v45 = vld [vmem:[#allocation10 + $0x30] ss:$8 sps:$4 sm:$0xff]   ;;  %v1172_v46 = vld [vmem:[#allocation7 + $0xc4] ss:$8 sps:$4 sm:$0xff]   ;;  %v1176_v48 = vld [vmem:[#allocation7 + $0xc0] ss:$8 sps:$4 sm:$0xff]  }
  0x7d   :  { %418 = vmatprep.subr.bf16.mxu1 %v1145_v10  ;;  %215 = vmatprep.subr.bf16.mxu0 %v1186_v23  ;;  %v1207_v47 = vld [vmem:[#allocation10 + $0x44] ss:$8 sps:$4 sm:$0xff]   ;;  %v1205_v49 = vld [vmem:[#allocation10 + $0x40] ss:$8 sps:$4 sm:$0xff]   ;;  %v1178_v50 = vld [vmem:[#allocation7 + $0xd4] ss:$8 sps:$4 sm:$0xff]  }
  0x7e   :  { %v1210_v51 = vld [vmem:[#allocation10 + $0x54] ss:$8 sps:$4 sm:$0xff]   ;;  %v1182_v52 = vld [vmem:[#allocation7 + $0xd0] ss:$8 sps:$4 sm:$0xff]   ;;  %v1184_v54 = vld [vmem:[#allocation7 + $0xe4] ss:$8 sps:$4 sm:$0xff]  }
  0x7f   :  { %v1208_v53 = vld [vmem:[#allocation10 + $0x50] ss:$8 sps:$4 sm:$0xff]   ;;  %v1213_v55 = vld [vmem:[#allocation10 + $0x64] ss:$8 sps:$4 sm:$0xff]   ;;  %v1188_v56 = vld [vmem:[#allocation7 + $0xe0] ss:$8 sps:$4 sm:$0xff]  }
  0x80   :  { %419 = vmatpush1.bf16.msra.mxu1 %v1147_v11  ;;  %216 = vmatpush1.bf16.msra.mxu0 %v1189_v25  ;;  %v1211_v57 = vld [vmem:[#allocation10 + $0x60] ss:$8 sps:$4 sm:$0xff]   ;;  %v1190_v58 = vld [vmem:[#allocation7 + $0xf4] ss:$8 sps:$4 sm:$0xff]   ;;  %v1192_v60 = vld [vmem:[#allocation7 + $0xf0] ss:$8 sps:$4 sm:$0xff]  }
  0x81   :  { %420 = vmatprep.subr.bf16.mxu1 %v1148_v12  ;;  %677 = vmatprep.subr.bf16.mxu0 %v1195_v30  ;;  %v1216_v59 = vld [vmem:[#allocation10 + $0x74] ss:$8 sps:$4 sm:$0xff]   ;;  %v119_v61 = vld [vmem:[#allocation3] sm:$0xff]  ;;  %v1214_v62 = vld [vmem:[#allocation10 + $0x70] ss:$8 sps:$4 sm:$0xff]   ;;  %vm1008_vm7 = vcmask 7168  }
  0x82   :  { %v1219_v63 = vld [vmem:[#allocation10 + $0x84] ss:$8 sps:$4 sm:$0xff]   ;;  %v121_v0 = vpack.c.bf16 %v119_v61, %v119_v61  ;;  %v1217_v1 = vld [vmem:[#allocation10 + $0x80] ss:$8 sps:$4 sm:$0xff]   ;;  %v1222_v2 = vld [vmem:[#allocation10 + $0x94] ss:$8 sps:$4 sm:$0xff]  }
  0x83   :  { %1026 = vmatmul.mubr.msk.bf16.vlgmr.msra.gmra.mrb[0].mxu0 %vm205_vm0, %v124_v31  ;;  %v1220_v3 = vld [vmem:[#allocation10 + $0x90] ss:$8 sps:$4 sm:$0xff]   ;;  %v1225_v4 = vld [vmem:[#allocation10 + $0xa4] ss:$8 sps:$4 sm:$0xff]   ;;  %v1223_v5 = vld [vmem:[#allocation10 + $0xa0] ss:$8 sps:$4 sm:$0xff]  }
  0x84   :  { %421 = vmatpush1.bf16.msra.mxu1 %v1150_v15  ;;  %678 = vmatpush1.bf16.msra.mxu0 %v1193_v33  ;;  %v1228_v6 = vld [vmem:[#allocation10 + $0xb4] ss:$8 sps:$4 sm:$0xff]   ;;  %v1226_v7 = vld [vmem:[#allocation10 + $0xb0] ss:$8 sps:$4 sm:$0xff]   ;;  %v1231_v8 = vld [vmem:[#allocation10 + $0xc4] ss:$8 sps:$4 sm:$0xff]  }
  0x85   :  { %422 = vmatprep.subr.bf16.mxu1 %v1151_v18  ;;  %679 = vmatprep.subr.bf16.mxu0 %v1198_v35  ;;  %v1229_v9 = vld [vmem:[#allocation10 + $0xc0] ss:$8 sps:$4 sm:$0xff]   ;;  %v1234_v10 = vld [vmem:[#allocation10 + $0xd4] ss:$8 sps:$4 sm:$0xff]   ;;  %v1232_v11 = vld [vmem:[#allocation10 + $0xd0] ss:$8 sps:$4 sm:$0xff]  }
  0x86   :  { %v1237_v12 = vld [vmem:[#allocation10 + $0xe4] ss:$8 sps:$4 sm:$0xff]   ;;  %v1235_v13 = vld [vmem:[#allocation10 + $0xe0] ss:$8 sps:$4 sm:$0xff]   ;;  %v1240_v14 = vld [vmem:[#allocation10 + $0xf4] ss:$8 sps:$4 sm:$0xff]  }
  0x87   :  { %v1238_v15 = vld [vmem:[#allocation10 + $0xf0] ss:$8 sps:$4 sm:$0xff]   ;;  %v1241_v16 = vld [vmem:[#allocation11] ss:$8 sps:$4 sm:$0xff]   ;;  %v1243_v17 = vld [vmem:[#allocation11 + $0x4] ss:$8 sps:$4 sm:$0xff]  }
  0x88   :  { %423 = vmatpush1.bf16.msra.mxu1 %v1153_v20  ;;  %680 = vmatpush1.bf16.msra.mxu0 %v1196_v37  ;;  %v1246_v18 = vld [vmem:[#allocation11 + $0x14] ss:$8 sps:$4 sm:$0xff]   ;;  %v1244_v19 = vld [vmem:[#allocation11 + $0x10] ss:$8 sps:$4 sm:$0xff]   ;;  %v1249_v20 = vld [vmem:[#allocation11 + $0x24] ss:$8 sps:$4 sm:$0xff]  }
  0x89   :  { %424 = vmatprep.subr.bf16.mxu1 %v1154_v22  ;;  %681 = vmatprep.subr.bf16.mxu0 %v1201_v39  ;;  %v1247_v21 = vld [vmem:[#allocation11 + $0x20] ss:$8 sps:$4 sm:$0xff]   ;;  %v1252_v22 = vld [vmem:[#allocation11 + $0x34] ss:$8 sps:$4 sm:$0xff]   ;;  %v1250_v23 = vld [vmem:[#allocation11 + $0x30] ss:$8 sps:$4 sm:$0xff]  }
  0x8a   :  { %v1253_v25 = vld [vmem:[#allocation11 + $0x40] ss:$8 sps:$4 sm:$0xff]   ;;  %v1258_v26 = vld [vmem:[#allocation11 + $0x54] ss:$8 sps:$4 sm:$0xff]   ;;  %v1256_v27 = vld [vmem:[#allocation11 + $0x50] ss:$8 sps:$4 sm:$0xff]  }
  0x8b   :  { %v1259_v29 = vld [vmem:[#allocation11 + $0x60] ss:$8 sps:$4 sm:$0xff]   ;;  %v1264_v30 = vld [vmem:[#allocation11 + $0x74] ss:$8 sps:$4 sm:$0xff]   ;;  %v1262_v31 = vld [vmem:[#allocation11 + $0x70] ss:$8 sps:$4 sm:$0xff]  }
  0x8c   :  { %425 = vmatpush1.bf16.msra.mxu1 %v1156_v24  ;;  %682 = vmatpush1.bf16.msra.mxu0 %v1199_v41  ;;  %v1255_v24 = vld [vmem:[#allocation11 + $0x44] ss:$8 sps:$4 sm:$0xff]   ;;  %v1265_v33 = vld [vmem:[#allocation11 + $0x80] ss:$8 sps:$4 sm:$0xff]   ;;  %v1268_v35 = vld [vmem:[#allocation11 + $0x90] ss:$8 sps:$4 sm:$0xff]  }
  0x8d   :  { %426 = vmatprep.subr.bf16.mxu1 %v1157_v28  ;;  %683 = vmatprep.subr.bf16.mxu0 %v1204_v43  ;;  %v1261_v28 = vld [vmem:[#allocation11 + $0x64] ss:$8 sps:$4 sm:$0xff]   ;;  %v1271_v37 = vld [vmem:[#allocation11 + $0xa0] ss:$8 sps:$4 sm:$0xff]   ;;  %v1274_v39 = vld [vmem:[#allocation11 + $0xb0] ss:$8 sps:$4 sm:$0xff]  }
  0x8e   :  { %v1277_v41 = vld [vmem:[#allocation11 + $0xc0] ss:$8 sps:$4 sm:$0xff]   ;;  %v1280_v43 = vld [vmem:[#allocation11 + $0xd0] ss:$8 sps:$4 sm:$0xff]  }
  0x90   :  { %427 = vmatpush1.bf16.msra.mxu1 %v1159_v32  ;;  %684 = vmatpush1.bf16.msra.mxu0 %v1202_v45  ;;  %v1267_v32 = vld [vmem:[#allocation11 + $0x84] ss:$8 sps:$4 sm:$0xff]  }
  0x91   :  { %428 = vmatprep.subr.bf16.mxu1 %v1160_v34  ;;  %685 = vmatprep.subr.bf16.mxu0 %v1207_v47  ;;  %v1270_v34 = vld [vmem:[#allocation11 + $0x94] ss:$8 sps:$4 sm:$0xff]  }
  0x94   :  { %429 = vmatpush1.bf16.msra.mxu1 %v1162_v36  ;;  %686 = vmatpush1.bf16.msra.mxu0 %v1205_v49  ;;  %v1273_v36 = vld [vmem:[#allocation11 + $0xa4] ss:$8 sps:$4 sm:$0xff]  }
  0x95   :  { %430 = vmatprep.subr.bf16.mxu1 %v1163_v38  ;;  %687 = vmatprep.subr.bf16.mxu0 %v1210_v51  ;;  %v1276_v38 = vld [vmem:[#allocation11 + $0xb4] ss:$8 sps:$4 sm:$0xff]   ;;  %v451_v51 = vld [vmem:[%s1620_s4] sm:$0x3] }
  0x98   :  { %431 = vmatpush1.bf16.msra.mxu1 %v1165_v40  ;;  %688 = vmatpush1.bf16.msra.mxu0 %v1208_v53  ;;  %v1279_v40 = vld [vmem:[#allocation11 + $0xc4] ss:$8 sps:$4 sm:$0xff]  }
  0x99   :  { %432 = vmatprep.subr.bf16.mxu1 %v1166_v42  ;;  %689 = vmatprep.subr.bf16.mxu0 %v1213_v55  ;;  %v1282_v42 = vld [vmem:[#allocation11 + $0xd4] ss:$8 sps:$4 sm:$0xff]  }
  0x9c   :  { %433 = vmatpush1.bf16.msra.mxu1 %v1170_v44  ;;  %690 = vmatpush1.bf16.msra.mxu0 %v1211_v57 }
  0x9d   :  { %434 = vmatprep.subr.bf16.mxu1 %v1172_v46  ;;  %691 = vmatprep.subr.bf16.mxu0 %v1216_v59 }
  0xa0   :  { %435 = vmatpush1.bf16.msra.mxu1 %v1176_v48  ;;  %692 = vmatpush1.bf16.msra.mxu0 %v1214_v62  ;;  %v453_v48 = vlaneseq }
  0xa1   :  { %436 = vmatprep.subr.bf16.mxu1 %v1178_v50  ;;  %693 = vmatprep.subr.bf16.mxu0 %v1219_v63 }
  0xa2   :  { %v454_v49 = vshrl.u32 %v453_v48, 7 }
  0xa4   :  { %437 = vmatpush1.bf16.msra.mxu1 %v1182_v52  ;;  %694 = vmatpush1.bf16.msra.mxu0 %v1217_v1  ;;  %v1589_v50 = vsub.s32 0, %v454_v49  ;;  %v1594_v52 = vsub.s32 1, %v454_v49 }
  0xa5   :  { %438 = vmatprep.subr.bf16.mxu1 %v1184_v54  ;;  %695 = vmatprep.subr.bf16.mxu0 %v1222_v2 }
  0xa6   :  { %v456_v53 = vrot.slane %v451_v51, %v1589_v50  ;;  %v460_v55 = vrot.slane %v451_v51, %v1594_v52 }
  0xa8   :  { %439 = vmatpush1.bf16.msra.mxu1 %v1188_v56  ;;  %696 = vmatpush1.bf16.msra.mxu0 %v1220_v3 }
  0xa9   :  { %440 = vmatprep.subr.bf16.mxu1 %v1190_v58  ;;  %697 = vmatprep.subr.bf16.mxu0 %v1225_v4 }
  0xac   :  { %441 = vmatpush1.bf16.msra.mxu1 %v1192_v60  ;;  %698 = vmatpush1.bf16.msra.mxu0 %v1223_v5  ;;  %v1285_v5 = vld [vmem:[#allocation11 + $0xe4] ss:$8 sps:$4 sm:$0xff]  }
  0xad   :  { %699 = vmatprep.subr.bf16.mxu0 %v1228_v6  ;;  %930 = vmatprep.subr.bf16.mxu1 %v1243_v17  ;;  %v1283_v6 = vld [vmem:[#allocation11 + $0xe0] ss:$8 sps:$4 sm:$0xff]  }
  0xaf   :  { %443 = vmatmul.mubr.bf16.vlgmr.msra.gmra.mrb[0].mxu1 %v121_v0 }
  0xb0   :  { %700 = vmatpush1.bf16.msra.mxu0 %v1226_v7  ;;  %931 = vmatpush1.bf16.msra.mxu1 %v1241_v16  ;;  %v1288_v7 = vld [vmem:[#allocation11 + $0xf4] ss:$8 sps:$4 sm:$0xff]  }
  0xb1   :  { %701 = vmatprep.subr.bf16.mxu0 %v1231_v8  ;;  %932 = vmatprep.subr.bf16.mxu1 %v1246_v18  ;;  %v1286_v8 = vld [vmem:[#allocation11 + $0xf0] ss:$8 sps:$4 sm:$0xff]  }
  0xb4   :  { %702 = vmatpush1.bf16.msra.mxu0 %v1229_v9  ;;  %933 = vmatpush1.bf16.msra.mxu1 %v1244_v19  ;;  %v505_v9 = vld [vmem:[%s1622_s6] sm:$0x3] }
  0xb5   :  { %703 = vmatprep.subr.bf16.mxu0 %v1234_v10  ;;  %934 = vmatprep.subr.bf16.mxu1 %v1249_v20  ;;  %v510_v10 = vrot.slane %v505_v9, %v1589_v50 }
  0xb8   :  { %704 = vmatpush1.bf16.msra.mxu0 %v1232_v11  ;;  %935 = vmatpush1.bf16.msra.mxu1 %v1247_v21  ;;  %v514_v11 = vrot.slane %v505_v9, %v1594_v52 }
  0xb9   :  { %705 = vmatprep.subr.bf16.mxu0 %v1237_v12  ;;  %936 = vmatprep.subr.bf16.mxu1 %v1252_v22 }
  0xbc   :  { %706 = vmatpush1.bf16.msra.mxu0 %v1235_v13  ;;  %937 = vmatpush1.bf16.msra.mxu1 %v1250_v23 }
  0xbd   :  { %707 = vmatprep.subr.bf16.mxu0 %v1240_v14  ;;  %938 = vmatprep.subr.bf16.mxu1 %v1255_v24  ;;  %v758_v24 = vld [vmem:[%s1624_s8] sm:$0x3] }
  0xc0   :  { %708 = vmatpush1.bf16.msra.mxu0 %v1238_v15  ;;  %939 = vmatpush1.bf16.msra.mxu1 %v1253_v25  ;;  %v763_v25 = vrot.slane %v758_v24, %v1589_v50 }
  0xc1   :  { %940 = vmatprep.subr.bf16.mxu1 %v1258_v26  ;;  %v767_v26 = vrot.slane %v758_v24, %v1594_v52 }
  0xc4   :  { %941 = vmatpush1.bf16.msra.mxu1 %v1256_v27  ;;  %v977_v27 = vld [vmem:[%s1625_s9] sm:$0x3] }
  0xc5   :  { %942 = vmatprep.subr.bf16.mxu1 %v1261_v28 }
  0xc8   :  { %943 = vmatpush1.bf16.msra.mxu1 %v1259_v29 }
  0xc9   :  { %944 = vmatprep.subr.bf16.mxu1 %v1264_v30 }
  0xcc   :  { %945 = vmatpush1.bf16.msra.mxu1 %v1262_v31 }
  0xcd   :  { %946 = vmatprep.subr.bf16.mxu1 %v1267_v32 }
  0xd0   :  { %947 = vmatpush1.bf16.msra.mxu1 %v1265_v33  ;;  %v982_v33 = vrot.slane %v977_v27, %v1589_v50 }
  0xd1   :  { %948 = vmatprep.subr.bf16.mxu1 %v1270_v34 }
  0xd4   :  { %949 = vmatpush1.bf16.msra.mxu1 %v1268_v35 }
  0xd5   :  { %950 = vmatprep.subr.bf16.mxu1 %v1273_v36  ;;  %v986_v36 = vrot.slane %v977_v27, %v1594_v52 }
  0xd8   :  { %951 = vmatpush1.bf16.msra.mxu1 %v1271_v37 }
  0xd9   :  { %952 = vmatprep.subr.bf16.mxu1 %v1276_v38 }
  0xdc   :  { %953 = vmatpush1.bf16.msra.mxu1 %v1274_v39 }
  0xdd   :  { %954 = vmatprep.subr.bf16.mxu1 %v1279_v40 }
  0xe0   :  { %955 = vmatpush1.bf16.msra.mxu1 %v1277_v41 }
  0xe1   :  { %956 = vmatprep.subr.bf16.mxu1 %v1282_v42 }
  0xe4   :  { %957 = vmatpush1.bf16.msra.mxu1 %v1280_v43  ;;  %v1123_v43 = vld [vmem:[#allocation2] ss:$0 sm:$0xff] }
  0xe5   :  { %958 = vmatprep.subr.bf16.mxu1 %v1285_v5 }
  0xe8   :  { %959 = vmatpush1.bf16.msra.mxu1 %v1283_v6 }
  0xe9   :  { %960 = vmatprep.subr.bf16.mxu1 %v1288_v7 }
  0xec   :  { %961 = vmatpush1.bf16.msra.mxu1 %v1286_v8 }
 0x156   :  { %v243_v44 = vpop.f32.mrb[0].mxu0 }
 0x157   :  { %v245_v45 = vpop.f32.mrb[1].mxu0 }
 0x158   :  { %v247_v46 = vpop.f32.mrb[2].mxu0 }
 0x159   :  { %v248_v47 = vpop.f32.mrb[3].mxu0 }
 0x182   :  { %v444_v54 = vpop.f32.mrb[0].mxu1 }
 0x183   :  { %v445_v56 = vadd.f32 %v444_v54, %v243_v44  ;;  %v446_v57 = vpop.f32.mrb[1].mxu1 }
 0x184   :  { %v447_v58 = vadd.f32 %v446_v57, %v245_v45  ;;  %v448_v59 = vpop.f32.mrb[2].mxu1 }
 0x185   :  { %v463_v60 = vadd.f32 %v456_v53, %v445_v56  ;;  %v449_v61 = vpop.f32.mrb[3].mxu1 }
 0x186   :  { %v464_v62 = vadd.f32 %v460_v55, %v447_v58 }
 0x187   :  { %vm465_vm1 = vcmp.ge.f32.partialorder %v463_v60, 0.0  ;;  %v467_v63 = vmul.f32 0.2, %v463_v60 }
 0x188   :  { %v468_v0 = vmul.f32 0.2, %v464_v62  ;;  %vm466_vm2 = vcmp.ge.f32.partialorder %v464_v62, 0.0 }
 0x189   :  { %v469_v1 = vsel %vm465_vm1, %v463_v60, %v467_v63 }
 0x18a   :  { %v470_v2 = vsel %vm466_vm2, %v464_v62, %v468_v0  ;;  %v471_v4 = vpack.c.bf16 %v469_v1, %v469_v1 }
 0x18b   :  { %v472_v3 = vpack.c.bf16 %v470_v2, %v470_v2 }
 0x18d   :  { %709 = vmatprep.mubr.bf16.mxu0 %v472_v3 }
 0x18e   :  { %710 = vmatmul.mubr.bf16.vlgmr.msra.gmra.mrb[4].mxu0 %v471_v4 }
 0x261   :  { %v711_v12 = vpop.f32.mrb[4].mxu0 }
 0x262   :  { %v712_v13 = vadd.f32 %v711_v12, %v510_v10  ;;  %v713_v14 = vpop.f32.mrb[5].mxu0 }
 0x263   :  { %v714_v15 = vadd.f32 %v713_v14, %v514_v11  ;;  %v715_v16 = vpop.f32.mrb[6].mxu0 }
 0x264   :  { %vm718_vm3 = vcmp.ge.f32.partialorder %v712_v13, 0.0  ;;  %v720_v17 = vmul.f32 0.2, %v712_v13  ;;  %v716_v18 = vpop.f32.mrb[7].mxu0 }
 0x265   :  { %vm719_vm4 = vcmp.ge.f32.partialorder %v714_v15, 0.0  ;;  %v721_v19 = vmul.f32 0.2, %v714_v15 }
 0x266   :  { %v722_v20 = vsel %vm718_vm3, %v712_v13, %v720_v17 }
 0x267   :  { %v723_v21 = vsel %vm719_vm4, %v714_v15, %v721_v19  ;;  %v724_v23 = vpack.c.bf16 %v722_v20, %v722_v20 }
 0x268   :  { %v725_v22 = vpack.c.bf16 %v723_v21, %v723_v21 }
 0x26a   :  { %962 = vmatprep.mubr.bf16.mxu1 %v725_v22 }
 0x26b   :  { %963 = vmatmul.mubr.bf16.vlgmr.msra.gmra.mrb[4].mxu1 %v724_v23 }
 0x33e   :  { %v964_v28 = vpop.f32.mrb[4].mxu1 }
 0x33f   :  { %v965_v29 = vadd.f32 %v964_v28, %v763_v25  ;;  %v966_v30 = vpop.f32.mrb[5].mxu1 }
 0x340   :  { %v967_v31 = vadd.f32 %v966_v30, %v767_v26  ;;  %v968_v32 = vpop.f32.mrb[6].mxu1 }
 0x341   :  { %vm971_vm5 = vcmp.ge.f32.partialorder %v965_v29, 0.0  ;;  %v973_v34 = vmul.f32 0.2, %v965_v29  ;;  %v969_v35 = vpop.f32.mrb[7].mxu1 }
 0x342   :  { %vm972_vm6 = vcmp.ge.f32.partialorder %v967_v31, 0.0  ;;  %v974_v37 = vmul.f32 0.2, %v967_v31 }
 0x343   :  { %v975_v38 = vsel %vm971_vm5, %v965_v29, %v973_v34 }
 0x344   :  { %v976_v39 = vsel %vm972_vm6, %v967_v31, %v974_v37  ;;  %v989_v40 = vmul.f32 %v982_v33, %v975_v38 }
 0x345   :  { %v990_v41 = vmul.f32 %v986_v36, %v976_v39 }
 0x347   :  { %v991_v42 = vadd.f32 %v990_v41, %v989_v40 }
 0x349   :  { %992 = vadd.xlane.f32.xlu0 %v991_v42 }
 0x3d6   :  { %v993_v44 = vpop.xlane.xlu0 %992 }
 0x3d7   :  { %v1001_v45 = vadd.f32 %v1123_v43, %v993_v44 }
 0x3d9   :  { %v1002_v46 = vsub.f32 0.0, %v1001_v45 }
 0x3db   :  { %v1003_v47 = vmul.f32 1.442695, %v1002_v46 }
 0x3dd   :  { %1289 = vpow2.f32 %v1003_v47 }
 0x3e7   :  { %v1290_v48 = vpop.eup %1289 }
 0x3e8   :  { %v1005_v49 = vadd.f32 1.0, %v1290_v48 }
 0x3ea   :  { %1291 = vrcp.f32 %v1005_v49 }
 0x3f4   :  { %v1292_v50 = vpop.eup %1291 }
 0x3f5   :  { %1009 = vst.msk [vmem:[%s1627_s11] sm:$0xff] %vm1008_vm7, %v1292_v50 }
 0x3f6   :  { %1014 = vsyncpa [#allocation4], 1 }
 0x3f7   :  { %1015 = vsyncpa [#allocation6], 1 }
 0x3f8   :  { %1016 = vsyncpa [#allocation9], 1 }
 0x3f9   :  { %1017 = vsyncpa [#allocation12], 1 }

// kernel: tpu_custom_call.1
= control target key start
LH: loop header
LB: loop body
LE: loop exit
PB: predicated region body
PF: predicated region fallthrough
CT: control target
= control target key end

     0   :  { %s1616_s0 = inlined_call_operand.hbm [shape: f32[8,256], index: 0, kind: input, shape index: {}]   ;;  %s1617_s1 = inlined_call_operand.hbm [shape: f32[8,64], index: 1, kind: input, shape index: {}]   ;;  %s1618_s2 = inlined_call_operand.hbm [shape: bf16[256,256], index: 2, kind: input, shape index: {}]   ;;  %s1619_s3 = inlined_call_operand.hbm [shape: bf16[64,256], index: 3, kind: input, shape index: {}]   ;;  %s1620_s4 = inlined_call_operand.vmem [shape: f32[1,256], index: 4, kind: input, shape index: {}]   ;;  %s1621_s5 = inlined_call_operand.hbm [shape: bf16[256,256], index: 5, kind: input, shape index: {}]   ;;  %s1622_s6 = inlined_call_operand.vmem [shape: f32[1,256], index: 6, kind: input, shape index: {}]   ;;  %s1623_s7 = inlined_call_operand.hbm [shape: bf16[256,256], index: 7, kind: input, shape index: {}]   ;;  %s1624_s8 = inlined_call_operand.vmem [shape: f32[1,256], index: 8, kind: input, shape index: {}]   ;;  %s1625_s9 = inlined_call_operand.vmem [shape: f32[1,256], index: 9, kind: input, shape index: {}]   ;;  %s1626_s10 = inlined_call_operand.<no memory space> [shape: f32[1,1], index: 10, kind: input, shape index: {}]   ;;  %s1627_s11 = inlined_call_operand.vmem [shape: f32[8,1], index: 11, kind: output, shape index: {}]  }
   0x1   :  { %v16_v0 = vstv %s1626_s10 }
   0x2   :  { %17 = vst [vmem:[#allocation2] sm:$0x1] %v16_v0 }
   0x3   :  { %18 = vsyncpa [#allocation4], 0 }
   0x4   :  { %19 = vsyncpa [#allocation6], 0 }
   0x5   :  { %20 = vsyncpa [#allocation9], 0 }
   0x6   :  { %21 = vsyncpa [#allocation12], 0  ;;  %s1433_s19 = smov [#allocation5]   ;;  %s1293_s23 = scalar_lea.hbm %s1617_s1, 128 }
   0x7   :  { %s38_s20 = sshll.u32 %s1433_s19, 4  ;;  %p1294_p0 = scmp.ne.s32.totalorder %s1617_s1, %s1293_s23  ;;  %s39_s20 = int_to_ptr.vmem [resolvable:$true] %s38_s20 }
   0x8   :  { %p1297_p1 = scmp.lt.u32.totalorder %s1293_s23, %s1617_s1 }
   0xa   :  { %p1299_p2 = pnand %p1297_p1, %p1294_p0 }
   0xc   :  { %1302 = shalt.err (!%p1299_p2)
}
   0xd   :  { %s1303_s10 = scalar_lea.vmem %s39_s20, 128  ;;  %p1308_p4 = scmp.lt.s32.totalorder %s39_s20, %s39_s20 }
   0xe   :  { %p1304_p3 = scmp.ne.s32.totalorder %s39_s20, %s1303_s10  ;;  %p1309_p5 = scmp.lt.s32.totalorder %s1303_s10, %s1303_s10 }
  0x10   :  { %p1310_p6 = por %p1309_p5, %p1308_p4 }
  0x12   :  { %p1311_p7 = pnand %p1310_p6, %p1304_p3 }
  0x14   :  { %1314 = shalt.err (!%p1311_p7)
}
  0x15   :  { %41 = dma.hbm_to_vmem [thread:$0]  %s1617_s1, 128, %s39_s20, [#allocation6]  }
  0x16   :  { %s1434_s30 = smov [#allocation8]   ;;  %s1435_s13 = smov [#allocation3]  }
  0x17   :  { %s59_s12 = sshll.u32 %s1434_s30, 4  ;;  %s28_s14 = sshll.u32 %s1435_s13, 4  ;;  %s60_s12 = int_to_ptr.vmem [resolvable:$true] %s59_s12  ;;  %s29_s14 = int_to_ptr.vmem [resolvable:$true] %s28_s14 }
  0x18   :  { %s1315_s17 = scalar_lea.hbm %s1619_s3, 1024 }
  0x19   :  { %p1316_p8 = scmp.ne.s32.totalorder %s1619_s3, %s1315_s17  ;;  %p1319_p9 = scmp.lt.u32.totalorder %s1315_s17, %s1619_s3 }
  0x1b   :  { %p1321_p10 = pnand %p1319_p9, %p1316_p8 }
  0x1d   :  { %1324 = shalt.err (!%p1321_p10)
}
  0x1e   :  { %s1325_s1 = scalar_lea.vmem %s60_s12, 1024  ;;  %p1330_p12 = scmp.lt.s32.totalorder %s60_s12, %s60_s12 }
  0x1f   :  { %p1326_p11 = scmp.ne.s32.totalorder %s60_s12, %s1325_s1  ;;  %p1331_p13 = scmp.lt.s32.totalorder %s1325_s1, %s1325_s1 }
  0x21   :  { %p1332_p0 = por %p1331_p13, %p1330_p12 }
  0x23   :  { %p1333_p1 = pnand %p1332_p0, %p1326_p11 }
  0x25   :  { %1336 = shalt.err (!%p1333_p1)
}
  0x26   :  { %s1436_s20 = smov 128   ;;  %s1437_s23 = smov 8  }
  0x27   :  { %65 = dma.hbm_to_vmem [thread:$0]  %s1619_s3, 1024, %s60_s12, [#allocation9], %s1436_s20, %s1436_s20, %s1437_s23  }
  0x28   :  { %s1337_s10 = scalar_lea.hbm %s1616_s0, 256 }
  0x29   :  { %p1338_p2 = scmp.ne.s32.totalorder %s1616_s0, %s1337_s10  ;;  %p1341_p3 = scmp.lt.u32.totalorder %s1337_s10, %s1616_s0 }
  0x2b   :  { %p1343_p4 = pnand %p1341_p3, %p1338_p2 }
  0x2d   :  { %1346 = shalt.err (!%p1343_p4)
}
  0x2e   :  { %s1347_s15 = scalar_lea.vmem %s29_s14, 256  ;;  %p1352_p6 = scmp.lt.s32.totalorder %s29_s14, %s29_s14 }
  0x2f   :  { %p1348_p5 = scmp.ne.s32.totalorder %s29_s14, %s1347_s15  ;;  %p1353_p7 = scmp.lt.s32.totalorder %s1347_s15, %s1347_s15 }
  0x31   :  { %p1354_p8 = por %p1353_p7, %p1352_p6 }
  0x33   :  { %p1355_p9 = pnand %p1354_p8, %p1348_p5 }
  0x35   :  { %1358 = shalt.err (!%p1355_p9)
}
  0x36   :  { %31 = dma.hbm_to_vmem [thread:$0]  %s1616_s0, 256, %s29_s14, [#allocation4]  }
  0x37   :  { %s1438_s16 = smov [#allocation7]   ;;  %s1439_s18 = smov [#allocation10]  }
  0x38   :  { %s47_s17 = sshll.u32 %s1438_s16, 4  ;;  %s73_s19 = sshll.u32 %s1439_s18, 4  ;;  %s48_s17 = int_to_ptr.vmem [resolvable:$true] %s47_s17  ;;  %s74_s19 = int_to_ptr.vmem [resolvable:$true] %s73_s19 }
  0x39   :  { %s1359_s1 = scalar_lea.hbm %s1618_s2, 4096 }
  0x3a   :  { %p1360_p10 = scmp.ne.s32.totalorder %s1618_s2, %s1359_s1  ;;  %p1363_p11 = scmp.lt.u32.totalorder %s1359_s1, %s1618_s2 }
  0x3c   :  { %p1365_p12 = pnand %p1363_p11, %p1360_p10 }
  0x3e   :  { %1368 = shalt.err (!%p1365_p12)
}
  0x3f   :  { %s1369_s0 = scalar_lea.vmem %s48_s17, 4096  ;;  %p1374_p0 = scmp.lt.s32.totalorder %s48_s17, %s48_s17 }
  0x40   :  { %p1370_p13 = scmp.ne.s32.totalorder %s48_s17, %s1369_s0  ;;  %p1375_p1 = scmp.lt.s32.totalorder %s1369_s0, %s1369_s0 }
  0x42   :  { %p1376_p2 = por %p1375_p1, %p1374_p0 }
  0x44   :  { %p1377_p3 = pnand %p1376_p2, %p1370_p13 }
  0x46   :  { %1380 = shalt.err (!%p1377_p3)
}
  0x47   :  { %53 = dma.hbm_to_vmem [thread:$0]  %s1618_s2, 4096, %s48_s17, [#allocation6], %s1436_s20, %s1436_s20, %s1437_s23  }
  0x48   :  { %s1381_s30 = scalar_lea.hbm %s1621_s5, 4096 }
  0x49   :  { %p1382_p4 = scmp.ne.s32.totalorder %s1621_s5, %s1381_s30  ;;  %p1385_p5 = scmp.lt.u32.totalorder %s1381_s30, %s1621_s5 }
  0x4b   :  { %p1387_p6 = pnand %p1385_p5, %p1382_p4 }
  0x4d   :  { %1390 = shalt.err (!%p1387_p6)
}
  0x4e   :  { %s1391_s16 = scalar_lea.vmem %s74_s19, 4096  ;;  %p1396_p8 = scmp.lt.s32.totalorder %s74_s19, %s74_s19 }
  0x4f   :  { %p1392_p7 = scmp.ne.s32.totalorder %s74_s19, %s1391_s16  ;;  %p1397_p9 = scmp.lt.s32.totalorder %s1391_s16, %s1391_s16 }
  0x51   :  { %p1398_p10 = por %p1397_p9, %p1396_p8 }
  0x53   :  { %p1399_p11 = pnand %p1398_p10, %p1392_p7 }
  0x55   :  { %1402 = shalt.err (!%p1399_p11)
}
  0x56   :  { %79 = dma.hbm_to_vmem [thread:$0]  %s1621_s5, 4096, %s74_s19, [#allocation9], %s1436_s20, %s1436_s20, %s1437_s23  }
  0x57   :  { %s1440_s18 = smov [#allocation11]   ;;  %s1403_s24 = scalar_lea.hbm %s1623_s7, 4096 }
  0x58   :  { %s87_s21 = sshll.u32 %s1440_s18, 4  ;;  %p1404_p12 = scmp.ne.s32.totalorder %s1623_s7, %s1403_s24  ;;  %s88_s21 = int_to_ptr.vmem [resolvable:$true] %s87_s21 }
  0x59   :  { %p1407_p13 = scmp.lt.u32.totalorder %s1403_s24, %s1623_s7 }
  0x5b   :  { %p1409_p0 = pnand %p1407_p13, %p1404_p12 }
  0x5d   :  { %1412 = shalt.err (!%p1409_p0)
}
  0x5e   :  { %s1413_s14 = scalar_lea.vmem %s88_s21, 4096  ;;  %p1418_p2 = scmp.lt.s32.totalorder %s88_s21, %s88_s21 }
  0x5f   :  { %p1414_p1 = scmp.ne.s32.totalorder %s88_s21, %s1413_s14  ;;  %p1419_p3 = scmp.lt.s32.totalorder %s1413_s14, %s1413_s14 }
  0x61   :  { %p1420_p4 = por %p1419_p3, %p1418_p2 }
  0x63   :  { %p1421_p5 = pnand %p1420_p4, %p1414_p1 }
  0x65   :  { %1424 = shalt.err (!%p1421_p5)
}
  0x66   :  { %93 = dma.hbm_to_vmem [thread:$0]  %s1623_s7, 4096, %s88_s21, [#allocation12], %s1436_s20, %s1436_s20, %s1437_s23  }
  0x67   :  { %1425 = dma.done.wait [#allocation4], 256  }
  0x68   :  { %1426 = vsyncadd [#allocation4], 4294967040 }
  0x69   :  { %1427 = dma.done.wait [#allocation6], 4224  }
  0x6a   :  { %1428 = vsyncadd [#allocation6], 4294963072 }
  0x6b   :  { %1429 = dma.done.wait [#allocation9], 5120  }
  0x6c   :  { %1430 = vsyncadd [#allocation9], 4294962176 }
  0x6d   :  { %1431 = dma.done.wait [#allocation12], 4096  }
  0x6e   :  { %1432 = vsyncadd [#allocation12], 4294963200  ;;  %v1441_v1 = vmov 0   ;;  %v1133_v2 = vld [vmem:[#allocation7 + $0x4] ss:$8 sps:$4 sm:$0xff]   ;;  %v123_v26 = vld [vmem:[#allocation5] sm:$0xff] }
  0x6f   :  { %241 = vmatprep.mubr.bf16.mxu0 %v1441_v1  ;;  %v1135_v3 = vld [vmem:[#allocation7] ss:$8 sps:$4 sm:$0xff]   ;;  %410 = vmatprep.subr.bf16.mxu1 %v1133_v2  ;;  %v1136_v4 = vld [vmem:[#allocation7 + $0x14] ss:$8 sps:$4 sm:$0xff]   ;;  %v1138_v5 = vld [vmem:[#allocation7 + $0x10] ss:$8 sps:$4 sm:$0xff]   ;;  %v124_v31 = vpack.c.bf16 %v123_v26, %v123_v26 }
  0x70   :  { %411 = vmatpush1.bf16.msra.mxu1 %v1135_v3  ;;  %v1139_v6 = vld [vmem:[#allocation7 + $0x24] ss:$8 sps:$4 sm:$0xff]   ;;  %v1141_v7 = vld [vmem:[#allocation7 + $0x20] ss:$8 sps:$4 sm:$0xff]   ;;  %v1142_v8 = vld [vmem:[#allocation7 + $0x34] ss:$8 sps:$4 sm:$0xff]  }
  0x71   :  { %412 = vmatprep.subr.bf16.mxu1 %v1136_v4  ;;  %v1144_v9 = vld [vmem:[#allocation7 + $0x30] ss:$8 sps:$4 sm:$0xff]   ;;  %v1145_v10 = vld [vmem:[#allocation7 + $0x44] ss:$8 sps:$4 sm:$0xff]   ;;  %v1147_v11 = vld [vmem:[#allocation7 + $0x40] ss:$8 sps:$4 sm:$0xff]  }
  0x72   :  { %v1148_v12 = vld [vmem:[#allocation7 + $0x54] ss:$8 sps:$4 sm:$0xff]   ;;  %v1168_v13 = vld [vmem:[#allocation8 + $0x4] ss:$8 sps:$4 sm:$0xff]   ;;  %v1171_v14 = vld [vmem:[#allocation8] ss:$8 sps:$4 sm:$0xff]  }
  0x73   :  { %209 = vmatprep.subr.bf16.mxu0 %v1168_v13  ;;  %v1150_v15 = vld [vmem:[#allocation7 + $0x50] ss:$8 sps:$4 sm:$0xff]   ;;  %v1174_v16 = vld [vmem:[#allocation8 + $0x14] ss:$8 sps:$4 sm:$0xff]   ;;  %v1151_v18 = vld [vmem:[#allocation7 + $0x64] ss:$8 sps:$4 sm:$0xff]  }
  0x74   :  { %413 = vmatpush1.bf16.msra.mxu1 %v1138_v5  ;;  %210 = vmatpush1.bf16.msra.mxu0 %v1171_v14  ;;  %v1177_v17 = vld [vmem:[#allocation8 + $0x10] ss:$8 sps:$4 sm:$0xff]   ;;  %v1180_v19 = vld [vmem:[#allocation8 + $0x24] ss:$8 sps:$4 sm:$0xff]   ;;  %v1153_v20 = vld [vmem:[#allocation7 + $0x60] ss:$8 sps:$4 sm:$0xff]  }
  0x75   :  { %414 = vmatprep.subr.bf16.mxu1 %v1139_v6  ;;  %211 = vmatprep.subr.bf16.mxu0 %v1174_v16  ;;  %v1183_v21 = vld [vmem:[#allocation8 + $0x20] ss:$8 sps:$4 sm:$0xff]   ;;  %v1154_v22 = vld [vmem:[#allocation7 + $0x74] ss:$8 sps:$4 sm:$0xff]   ;;  %v1156_v24 = vld [vmem:[#allocation7 + $0x70] ss:$8 sps:$4 sm:$0xff]  }
  0x76   :  { %v1186_v23 = vld [vmem:[#allocation8 + $0x34] ss:$8 sps:$4 sm:$0xff]   ;;  %v1189_v25 = vld [vmem:[#allocation8 + $0x30] ss:$8 sps:$4 sm:$0xff]   ;;  %v1157_v28 = vld [vmem:[#allocation7 + $0x84] ss:$8 sps:$4 sm:$0xff]  }
  0x77   :  { %v120_v27 = vld [vmem:[#allocation3 + $0x8] sm:$0xff]  ;;  %v1195_v30 = vld [vmem:[#allocation10 + $0x4] ss:$8 sps:$4 sm:$0xff]   ;;  %v1159_v32 = vld [vmem:[#allocation7 + $0x80] ss:$8 sps:$4 sm:$0xff]   ;;  %vm205_vm0 = vcmask 523264  }
  0x78   :  { %415 = vmatpush1.bf16.msra.mxu1 %v1141_v7  ;;  %212 = vmatpush1.bf16.msra.mxu0 %v1177_v17  ;;  %v122_v29 = vpack.c.bf16 %v120_v27, %v120_v27  ;;  %v1193_v33 = vld [vmem:[#allocation10] ss:$8 sps:$4 sm:$0xff]   ;;  %v1160_v34 = vld [vmem:[#allocation7 + $0x94] ss:$8 sps:$4 sm:$0xff]   ;;  %v1162_v36 = vld [vmem:[#allocation7 + $0x90] ss:$8 sps:$4 sm:$0xff]  }
  0x79   :  { %416 = vmatprep.subr.bf16.mxu1 %v1142_v8  ;;  %213 = vmatprep.subr.bf16.mxu0 %v1180_v19  ;;  %v1198_v35 = vld [vmem:[#allocation10 + $0x14] ss:$8 sps:$4 sm:$0xff]   ;;  %v1196_v37 = vld [vmem:[#allocation10 + $0x10] ss:$8 sps:$4 sm:$0xff]   ;;  %v1163_v38 = vld [vmem:[#allocation7 + $0xa4] ss:$8 sps:$4 sm:$0xff]  }
  0x7a   :  { %442 = vmatprep.mubr.bf16.mxu1 %v122_v29  ;;  %v1201_v39 = vld [vmem:[#allocation10 + $0x24] ss:$8 sps:$4 sm:$0xff]   ;;  %v1165_v40 = vld [vmem:[#allocation7 + $0xa0] ss:$8 sps:$4 sm:$0xff]   ;;  %v1166_v42 = vld [vmem:[#allocation7 + $0xb4] ss:$8 sps:$4 sm:$0xff]  }
  0x7b   :  { %v1199_v41 = vld [vmem:[#allocation10 + $0x20] ss:$8 sps:$4 sm:$0xff]   ;;  %v1204_v43 = vld [vmem:[#allocation10 + $0x34] ss:$8 sps:$4 sm:$0xff]   ;;  %v1170_v44 = vld [vmem:[#allocation7 + $0xb0] ss:$8 sps:$4 sm:$0xff]  }
  0x7c   :  { %417 = vmatpush1.bf16.msra.mxu1 %v1144_v9  ;;  %214 = vmatpush1.bf16.msra.mxu0 %v1183_v21  ;;  %v1202_v45 = vld [vmem:[#allocation10 + $0x30] ss:$8 sps:$4 sm:$0xff]   ;;  %v1172_v46 = vld [vmem:[#allocation7 + $0xc4] ss:$8 sps:$4 sm:$0xff]   ;;  %v1176_v48 = vld [vmem:[#allocation7 + $0xc0] ss:$8 sps:$4 sm:$0xff]  }
  0x7d   :  { %418 = vmatprep.subr.bf16.mxu1 %v1145_v10  ;;  %215 = vmatprep.subr.bf16.mxu0 %v1186_v23  ;;  %v1207_v47 = vld [vmem:[#allocation10 + $0x44] ss:$8 sps:$4 sm:$0xff]   ;;  %v1205_v49 = vld [vmem:[#allocation10 + $0x40] ss:$8 sps:$4 sm:$0xff]   ;;  %v1178_v50 = vld [vmem:[#allocation7 + $0xd4] ss:$8 sps:$4 sm:$0xff]  }
  0x7e   :  { %v1210_v51 = vld [vmem:[#allocation10 + $0x54] ss:$8 sps:$4 sm:$0xff]   ;;  %v1182_v52 = vld [vmem:[#allocation7 + $0xd0] ss:$8 sps:$4 sm:$0xff]   ;;  %v1184_v54 = vld [vmem:[#allocation7 + $0xe4] ss:$8 sps:$4 sm:$0xff]  }
  0x7f   :  { %v1208_v53 = vld [vmem:[#allocation10 + $0x50] ss:$8 sps:$4 sm:$0xff]   ;;  %v1213_v55 = vld [vmem:[#allocation10 + $0x64] ss:$8 sps:$4 sm:$0xff]   ;;  %v1188_v56 = vld [vmem:[#allocation7 + $0xe0] ss:$8 sps:$4 sm:$0xff]  }
  0x80   :  { %419 = vmatpush1.bf16.msra.mxu1 %v1147_v11  ;;  %216 = vmatpush1.bf16.msra.mxu0 %v1189_v25  ;;  %v1211_v57 = vld [vmem:[#allocation10 + $0x60] ss:$8 sps:$4 sm:$0xff]   ;;  %v1190_v58 = vld [vmem:[#allocation7 + $0xf4] ss:$8 sps:$4 sm:$0xff]   ;;  %v1192_v60 = vld [vmem:[#allocation7 + $0xf0] ss:$8 sps:$4 sm:$0xff]  }
  0x81   :  { %420 = vmatprep.subr.bf16.mxu1 %v1148_v12  ;;  %677 = vmatprep.subr.bf16.mxu0 %v1195_v30  ;;  %v1216_v59 = vld [vmem:[#allocation10 + $0x74] ss:$8 sps:$4 sm:$0xff]   ;;  %v119_v61 = vld [vmem:[#allocation3] sm:$0xff]  ;;  %v1214_v62 = vld [vmem:[#allocation10 + $0x70] ss:$8 sps:$4 sm:$0xff]   ;;  %vm1008_vm7 = vcmask 7168  }
  0x82   :  { %v1219_v63 = vld [vmem:[#allocation10 + $0x84] ss:$8 sps:$4 sm:$0xff]   ;;  %v121_v0 = vpack.c.bf16 %v119_v61, %v119_v61  ;;  %v1217_v1 = vld [vmem:[#allocation10 + $0x80] ss:$8 sps:$4 sm:$0xff]   ;;  %v1222_v2 = vld [vmem:[#allocation10 + $0x94] ss:$8 sps:$4 sm:$0xff]  }
  0x83   :  { %1026 = vmatmul.mubr.msk.bf16.vlgmr.msra.gmra.mrb[0].mxu0 %vm205_vm0, %v124_v31  ;;  %v1220_v3 = vld [vmem:[#allocation10 + $0x90] ss:$8 sps:$4 sm:$0xff]   ;;  %v1225_v4 = vld [vmem:[#allocation10 + $0xa4] ss:$8 sps:$4 sm:$0xff]   ;;  %v1223_v5 = vld [vmem:[#allocation10 + $0xa0] ss:$8 sps:$4 sm:$0xff]  }
  0x84   :  { %421 = vmatpush1.bf16.msra.mxu1 %v1150_v15  ;;  %678 = vmatpush1.bf16.msra.mxu0 %v1193_v33  ;;  %v1228_v6 = vld [vmem:[#allocation10 + $0xb4] ss:$8 sps:$4 sm:$0xff]   ;;  %v1226_v7 = vld [vmem:[#allocation10 + $0xb0] ss:$8 sps:$4 sm:$0xff]   ;;  %v1231_v8 = vld [vmem:[#allocation10 + $0xc4] ss:$8 sps:$4 sm:$0xff]  }
  0x85   :  { %422 = vmatprep.subr.bf16.mxu1 %v1151_v18  ;;  %679 = vmatprep.subr.bf16.mxu0 %v1198_v35  ;;  %v1229_v9 = vld [vmem:[#allocation10 + $0xc0] ss:$8 sps:$4 sm:$0xff]   ;;  %v1234_v10 = vld [vmem:[#allocation10 + $0xd4] ss:$8 sps:$4 sm:$0xff]   ;;  %v1232_v11 = vld [vmem:[#allocation10 + $0xd0] ss:$8 sps:$4 sm:$0xff]  }
  0x86   :  { %v1237_v12 = vld [vmem:[#allocation10 + $0xe4] ss:$8 sps:$4 sm:$0xff]   ;;  %v1235_v13 = vld [vmem:[#allocation10 + $0xe0] ss:$8 sps:$4 sm:$0xff]   ;;  %v1240_v14 = vld [vmem:[#allocation10 + $0xf4] ss:$8 sps:$4 sm:$0xff]  }
  0x87   :  { %v1238_v15 = vld [vmem:[#allocation10 + $0xf0] ss:$8 sps:$4 sm:$0xff]   ;;  %v1241_v16 = vld [vmem:[#allocation11] ss:$8 sps:$4 sm:$0xff]   ;;  %v1243_v17 = vld [vmem:[#allocation11 + $0x4] ss:$8 sps:$4 sm:$0xff]  }
  0x88   :  { %423 = vmatpush1.bf16.msra.mxu1 %v1153_v20  ;;  %680 = vmatpush1.bf16.msra.mxu0 %v1196_v37  ;;  %v1246_v18 = vld [vmem:[#allocation11 + $0x14] ss:$8 sps:$4 sm:$0xff]   ;;  %v1244_v19 = vld [vmem:[#allocation11 + $0x10] ss:$8 sps:$4 sm:$0xff]   ;;  %v1249_v20 = vld [vmem:[#allocation11 + $0x24] ss:$8 sps:$4 sm:$0xff]  }
  0x89   :  { %424 = vmatprep.subr.bf16.mxu1 %v1154_v22  ;;  %681 = vmatprep.subr.bf16.mxu0 %v1201_v39  ;;  %v1247_v21 = vld [vmem:[#allocation11 + $0x20] ss:$8 sps:$4 sm:$0xff]   ;;  %v1252_v22 = vld [vmem:[#allocation11 + $0x34] ss:$8 sps:$4 sm:$0xff]   ;;  %v1250_v23 = vld [vmem:[#allocation11 + $0x30] ss:$8 sps:$4 sm:$0xff]  }
  0x8a   :  { %v1253_v25 = vld [vmem:[#allocation11 + $0x40] ss:$8 sps:$4 sm:$0xff]   ;;  %v1258_v26 = vld [vmem:[#allocation11 + $0x54] ss:$8 sps:$4 sm:$0xff]   ;;  %v1256_v27 = vld [vmem:[#allocation11 + $0x50] ss:$8 sps:$4 sm:$0xff]  }
  0x8b   :  { %v1259_v29 = vld [vmem:[#allocation11 + $0x60] ss:$8 sps:$4 sm:$0xff]   ;;  %v1264_v30 = vld [vmem:[#allocation11 + $0x74] ss:$8 sps:$4 sm:$0xff]   ;;  %v1262_v31 = vld [vmem:[#allocation11 + $0x70] ss:$8 sps:$4 sm:$0xff]  }
  0x8c   :  { %425 = vmatpush1.bf16.msra.mxu1 %v1156_v24  ;;  %682 = vmatpush1.bf16.msra.mxu0 %v1199_v41  ;;  %v1255_v24 = vld [vmem:[#allocation11 + $0x44] ss:$8 sps:$4 sm:$0xff]   ;;  %v1265_v33 = vld [vmem:[#allocation11 + $0x80] ss:$8 sps:$4 sm:$0xff]   ;;  %v1268_v35 = vld [vmem:[#allocation11 + $0x90] ss:$8 sps:$4 sm:$0xff]  }
  0x8d   :  { %426 = vmatprep.subr.bf16.mxu1 %v1157_v28  ;;  %683 = vmatprep.subr.bf16.mxu0 %v1204_v43  ;;  %v1261_v28 = vld [vmem:[#allocation11 + $0x64] ss:$8 sps:$4 sm:$0xff]   ;;  %v1271_v37 = vld [vmem:[#allocation11 + $0xa0] ss:$8 sps:$4 sm:$0xff]   ;;  %v1274_v39 = vld [vmem:[#allocation11 + $0xb0] ss:$8 sps:$4 sm:$0xff]  }
  0x8e   :  { %v1277_v41 = vld [vmem:[#allocation11 + $0xc0] ss:$8 sps:$4 sm:$0xff]   ;;  %v1280_v43 = vld [vmem:[#allocation11 + $0xd0] ss:$8 sps:$4 sm:$0xff]  }
  0x90   :  { %427 = vmatpush1.bf16.msra.mxu1 %v1159_v32  ;;  %684 = vmatpush1.bf16.msra.mxu0 %v1202_v45  ;;  %v1267_v32 = vld [vmem:[#allocation11 + $0x84] ss:$8 sps:$4 sm:$0xff]  }
  0x91   :  { %428 = vmatprep.subr.bf16.mxu1 %v1160_v34  ;;  %685 = vmatprep.subr.bf16.mxu0 %v1207_v47  ;;  %v1270_v34 = vld [vmem:[#allocation11 + $0x94] ss:$8 sps:$4 sm:$0xff]  }
  0x94   :  { %429 = vmatpush1.bf16.msra.mxu1 %v1162_v36  ;;  %686 = vmatpush1.bf16.msra.mxu0 %v1205_v49  ;;  %v1273_v36 = vld [vmem:[#allocation11 + $0xa4] ss:$8 sps:$4 sm:$0xff]  }
  0x95   :  { %430 = vmatprep.subr.bf16.mxu1 %v1163_v38  ;;  %687 = vmatprep.subr.bf16.mxu0 %v1210_v51  ;;  %v1276_v38 = vld [vmem:[#allocation11 + $0xb4] ss:$8 sps:$4 sm:$0xff]   ;;  %v451_v51 = vld [vmem:[%s1620_s4] sm:$0x3] }
  0x98   :  { %431 = vmatpush1.bf16.msra.mxu1 %v1165_v40  ;;  %688 = vmatpush1.bf16.msra.mxu0 %v1208_v53  ;;  %v1279_v40 = vld [vmem:[#allocation11 + $0xc4] ss:$8 sps:$4 sm:$0xff]  }
  0x99   :  { %432 = vmatprep.subr.bf16.mxu1 %v1166_v42  ;;  %689 = vmatprep.subr.bf16.mxu0 %v1213_v55  ;;  %v1282_v42 = vld [vmem:[#allocation11 + $0xd4] ss:$8 sps:$4 sm:$0xff]  }
  0x9c   :  { %433 = vmatpush1.bf16.msra.mxu1 %v1170_v44  ;;  %690 = vmatpush1.bf16.msra.mxu0 %v1211_v57 }
  0x9d   :  { %434 = vmatprep.subr.bf16.mxu1 %v1172_v46  ;;  %691 = vmatprep.subr.bf16.mxu0 %v1216_v59 }
  0xa0   :  { %435 = vmatpush1.bf16.msra.mxu1 %v1176_v48  ;;  %692 = vmatpush1.bf16.msra.mxu0 %v1214_v62  ;;  %v453_v48 = vlaneseq }
  0xa1   :  { %436 = vmatprep.subr.bf16.mxu1 %v1178_v50  ;;  %693 = vmatprep.subr.bf16.mxu0 %v1219_v63 }
  0xa2   :  { %v454_v49 = vshrl.u32 %v453_v48, 7 }
  0xa4   :  { %437 = vmatpush1.bf16.msra.mxu1 %v1182_v52  ;;  %694 = vmatpush1.bf16.msra.mxu0 %v1217_v1  ;;  %v1589_v50 = vsub.s32 0, %v454_v49  ;;  %v1594_v52 = vsub.s32 1, %v454_v49 }
  0xa5   :  { %438 = vmatprep.subr.bf16.mxu1 %v1184_v54  ;;  %695 = vmatprep.subr.bf16.mxu0 %v1222_v2 }
  0xa6   :  { %v456_v53 = vrot.slane %v451_v51, %v1589_v50  ;;  %v460_v55 = vrot.slane %v451_v51, %v1594_v52 }
  0xa8   :  { %439 = vmatpush1.bf16.msra.mxu1 %v1188_v56  ;;  %696 = vmatpush1.bf16.msra.mxu0 %v1220_v3 }
  0xa9   :  { %440 = vmatprep.subr.bf16.mxu1 %v1190_v58  ;;  %697 = vmatprep.subr.bf16.mxu0 %v1225_v4 }
  0xac   :  { %441 = vmatpush1.bf16.msra.mxu1 %v1192_v60  ;;  %698 = vmatpush1.bf16.msra.mxu0 %v1223_v5  ;;  %v1285_v5 = vld [vmem:[#allocation11 + $0xe4] ss:$8 sps:$4 sm:$0xff]  }
  0xad   :  { %699 = vmatprep.subr.bf16.mxu0 %v1228_v6  ;;  %930 = vmatprep.subr.bf16.mxu1 %v1243_v17  ;;  %v1283_v6 = vld [vmem:[#allocation11 + $0xe0] ss:$8 sps:$4 sm:$0xff]  }
  0xaf   :  { %443 = vmatmul.mubr.bf16.vlgmr.msra.gmra.mrb[0].mxu1 %v121_v0 }
  0xb0   :  { %700 = vmatpush1.bf16.msra.mxu0 %v1226_v7  ;;  %931 = vmatpush1.bf16.msra.mxu1 %v1241_v16  ;;  %v1288_v7 = vld [vmem:[#allocation11 + $0xf4] ss:$8 sps:$4 sm:$0xff]  }
  0xb1   :  { %701 = vmatprep.subr.bf16.mxu0 %v1231_v8  ;;  %932 = vmatprep.subr.bf16.mxu1 %v1246_v18  ;;  %v1286_v8 = vld [vmem:[#allocation11 + $0xf0] ss:$8 sps:$4 sm:$0xff]  }
  0xb4   :  { %702 = vmatpush1.bf16.msra.mxu0 %v1229_v9  ;;  %933 = vmatpush1.bf16.msra.mxu1 %v1244_v19  ;;  %v505_v9 = vld [vmem:[%s1622_s6] sm:$0x3] }
  0xb5   :  { %703 = vmatprep.subr.bf16.mxu0 %v1234_v10  ;;  %934 = vmatprep.subr.bf16.mxu1 %v1249_v20  ;;  %v510_v10 = vrot.slane %v505_v9, %v1589_v50 }
  0xb8   :  { %704 = vmatpush1.bf16.msra.mxu0 %v1232_v11  ;;  %935 = vmatpush1.bf16.msra.mxu1 %v1247_v21  ;;  %v514_v11 = vrot.slane %v505_v9, %v1594_v52 }
  0xb9   :  { %705 = vmatprep.subr.bf16.mxu0 %v1237_v12  ;;  %936 = vmatprep.subr.bf16.mxu1 %v1252_v22 }
  0xbc   :  { %706 = vmatpush1.bf16.msra.mxu0 %v1235_v13  ;;  %937 = vmatpush1.bf16.msra.mxu1 %v1250_v23 }
  0xbd   :  { %707 = vmatprep.subr.bf16.mxu0 %v1240_v14  ;;  %938 = vmatprep.subr.bf16.mxu1 %v1255_v24  ;;  %v758_v24 = vld [vmem:[%s1624_s8] sm:$0x3] }
  0xc0   :  { %708 = vmatpush1.bf16.msra.mxu0 %v1238_v15  ;;  %939 = vmatpush1.bf16.msra.mxu1 %v1253_v25  ;;  %v763_v25 = vrot.slane %v758_v24, %v1589_v50 }
  0xc1   :  { %940 = vmatprep.subr.bf16.mxu1 %v1258_v26  ;;  %v767_v26 = vrot.slane %v758_v24, %v1594_v52 }
  0xc4   :  { %941 = vmatpush1.bf16.msra.mxu1 %v1256_v27  ;;  %v977_v27 = vld [vmem:[%s1625_s9] sm:$0x3] }
  0xc5   :  { %942 = vmatprep.subr.bf16.mxu1 %v1261_v28 }
  0xc8   :  { %943 = vmatpush1.bf16.msra.mxu1 %v1259_v29 }
  0xc9   :  { %944 = vmatprep.subr.bf16.mxu1 %v1264_v30 }
  0xcc   :  { %945 = vmatpush1.bf16.msra.mxu1 %v1262_v31 }
  0xcd   :  { %946 = vmatprep.subr.bf16.mxu1 %v1267_v32 }
  0xd0   :  { %947 = vmatpush1.bf16.msra.mxu1 %v1265_v33  ;;  %v982_v33 = vrot.slane %v977_v27, %v1589_v50 }
  0xd1   :  { %948 = vmatprep.subr.bf16.mxu1 %v1270_v34 }
  0xd4   :  { %949 = vmatpush1.bf16.msra.mxu1 %v1268_v35 }
  0xd5   :  { %950 = vmatprep.subr.bf16.mxu1 %v1273_v36  ;;  %v986_v36 = vrot.slane %v977_v27, %v1594_v52 }
  0xd8   :  { %951 = vmatpush1.bf16.msra.mxu1 %v1271_v37 }
  0xd9   :  { %952 = vmatprep.subr.bf16.mxu1 %v1276_v38 }
  0xdc   :  { %953 = vmatpush1.bf16.msra.mxu1 %v1274_v39 }
  0xdd   :  { %954 = vmatprep.subr.bf16.mxu1 %v1279_v40 }
  0xe0   :  { %955 = vmatpush1.bf16.msra.mxu1 %v1277_v41 }
  0xe1   :  { %956 = vmatprep.subr.bf16.mxu1 %v1282_v42 }
  0xe4   :  { %957 = vmatpush1.bf16.msra.mxu1 %v1280_v43  ;;  %v1123_v43 = vld [vmem:[#allocation2] ss:$0 sm:$0xff] }
  0xe5   :  { %958 = vmatprep.subr.bf16.mxu1 %v1285_v5 }
  0xe8   :  { %959 = vmatpush1.bf16.msra.mxu1 %v1283_v6 }
  0xe9   :  { %960 = vmatprep.subr.bf16.mxu1 %v1288_v7 }
  0xec   :  { %961 = vmatpush1.bf16.msra.mxu1 %v1286_v8 }
 0x156   :  { %v243_v44 = vpop.f32.mrb[0].mxu0 }
 0x157   :  { %v245_v45 = vpop.f32.mrb[1].mxu0 }
 0x158   :  { %v247_v46 = vpop.f32.mrb[2].mxu0 }
 0x159   :  { %v248_v47 = vpop.f32.mrb[3].mxu0 }
 0x182   :  { %v444_v54 = vpop.f32.mrb[0].mxu1 }
 0x183   :  { %v445_v56 = vadd.f32 %v444_v54, %v243_v44  ;;  %v446_v57 = vpop.f32.mrb[1].mxu1 }
 0x184   :  { %v447_v58 = vadd.f32 %v446_v57, %v245_v45  ;;  %v448_v59 = vpop.f32.mrb[2].mxu1 }
 0x185   :  { %v463_v60 = vadd.f32 %v456_v53, %v445_v56  ;;  %v449_v61 = vpop.f32.mrb[3].mxu1 }
 0x186   :  { %v464_v62 = vadd.f32 %v460_v55, %v447_v58 }
 0x187   :  { %vm465_vm1 = vcmp.ge.f32.partialorder %v463_v60, 0.0  ;;  %v467_v63 = vmul.f32 0.2, %v463_v60 }
 0x188   :  { %v468_v0 = vmul.f32 0.2, %v464_v62  ;;  %vm466_vm2 = vcmp.ge.f32.partialorder %v464_v62, 0.0 }
 0x189   :  { %v469_v1 = vsel %vm465_vm1, %v463_v60, %v467_v63 }
 0x18a   :  { %v470_v2 = vsel %vm466_vm2, %v464_v62, %v468_v0  ;;  %v471_v4 = vpack.c.bf16 %v469_v1, %v469_v1 }
 0x18b   :  { %v472_v3 = vpack.c.bf16 %v470_v2, %v470_v2 }
 0x18d   :  { %709 = vmatprep.mubr.bf16.mxu0 %v472_v3 }
 0x18e   :  { %710 = vmatmul.mubr.bf16.vlgmr.msra.gmra.mrb[4].mxu0 %v471_v4 }
 0x261   :  { %v711_v12 = vpop.f32.mrb[4].mxu0 }
 0x262   :  { %v712_v13 = vadd.f32 %v711_v12, %v510_v10  ;;  %v713_v14 = vpop.f32.mrb[5].mxu0 }
 0x263   :  { %v714_v15 = vadd.f32 %v713_v14, %v514_v11  ;;  %v715_v16 = vpop.f32.mrb[6].mxu0 }
 0x264   :  { %vm718_vm3 = vcmp.ge.f32.partialorder %v712_v13, 0.0  ;;  %v720_v17 = vmul.f32 0.2, %v712_v13  ;;  %v716_v18 = vpop.f32.mrb[7].mxu0 }
 0x265   :  { %vm719_vm4 = vcmp.ge.f32.partialorder %v714_v15, 0.0  ;;  %v721_v19 = vmul.f32 0.2, %v714_v15 }
 0x266   :  { %v722_v20 = vsel %vm718_vm3, %v712_v13, %v720_v17 }
 0x267   :  { %v723_v21 = vsel %vm719_vm4, %v714_v15, %v721_v19  ;;  %v724_v23 = vpack.c.bf16 %v722_v20, %v722_v20 }
 0x268   :  { %v725_v22 = vpack.c.bf16 %v723_v21, %v723_v21 }
 0x26a   :  { %962 = vmatprep.mubr.bf16.mxu1 %v725_v22 }
 0x26b   :  { %963 = vmatmul.mubr.bf16.vlgmr.msra.gmra.mrb[4].mxu1 %v724_v23 }
 0x33e   :  { %v964_v28 = vpop.f32.mrb[4].mxu1 }
 0x33f   :  { %v965_v29 = vadd.f32 %v964_v28, %v763_v25  ;;  %v966_v30 = vpop.f32.mrb[5].mxu1 }
 0x340   :  { %v967_v31 = vadd.f32 %v966_v30, %v767_v26  ;;  %v968_v32 = vpop.f32.mrb[6].mxu1 }
 0x341   :  { %vm971_vm5 = vcmp.ge.f32.partialorder %v965_v29, 0.0  ;;  %v973_v34 = vmul.f32 0.2, %v965_v29  ;;  %v969_v35 = vpop.f32.mrb[7].mxu1 }
 0x342   :  { %vm972_vm6 = vcmp.ge.f32.partialorder %v967_v31, 0.0  ;;  %v974_v37 = vmul.f32 0.2, %v967_v31 }
 0x343   :  { %v975_v38 = vsel %vm971_vm5, %v965_v29, %v973_v34 }
 0x344   :  { %v976_v39 = vsel %vm972_vm6, %v967_v31, %v974_v37  ;;  %v989_v40 = vmul.f32 %v982_v33, %v975_v38 }
 0x345   :  { %v990_v41 = vmul.f32 %v986_v36, %v976_v39 }
 0x347   :  { %v991_v42 = vadd.f32 %v990_v41, %v989_v40 }
 0x349   :  { %992 = vadd.xlane.f32.xlu0 %v991_v42 }
 0x3d6   :  { %v993_v44 = vpop.xlane.xlu0 %992 }
 0x3d7   :  { %v1001_v45 = vadd.f32 %v1123_v43, %v993_v44 }
 0x3d9   :  { %v1002_v46 = vsub.f32 0.0, %v1001_v45 }
 0x3db   :  { %v1003_v47 = vmul.f32 1.442695, %v1002_v46 }
 0x3dd   :  { %1289 = vpow2.f32 %v1003_v47 }
 0x3e7   :  { %v1290_v48 = vpop.eup %1289 }
 0x3e8   :  { %v1005_v49 = vadd.f32 1.0, %v1290_v48 }
 0x3ea   :  { %1291 = vrcp.f32 %v1005_v49 }
 0x3f4   :  { %v1292_v50 = vpop.eup %1291 }
 0x3f5   :  { %1009 = vst.msk [vmem:[%s1627_s11] sm:$0xff] %vm1008_vm7, %v1292_v50 }
 0x3f6   :  { %1014 = vsyncpa [#allocation4], 1 }
 0x3f7   :  { %1015 = vsyncpa [#allocation6], 1 }
 0x3f8   :  { %1016 = vsyncpa [#allocation9], 1 }
 0x3f9   :  { %1017 = vsyncpa [#allocation12], 1 }

</bundles_post_ra>
